<compile_context>
chip_gen: v5e
topology: v5e:2x2
jax: 0.10.0
libtpu: 0.0.40
codegen_flags: <defaults>
</compile_context>

<pallas_src>
import math

import jax
import jax.numpy as jnp
from jax import lax
from jax.experimental import pallas as pl
from jax.experimental.pallas import tpu as pltpu

WINDOW_SIZE = 11
SIGMA = 1.5
PAD = WINDOW_SIZE // 2            # 5

# Deterministic 1-D Gaussian (same formula as the PyTorch `gaussian()` helper).
_g = [math.exp(-((i - WINDOW_SIZE // 2) ** 2) / (2.0 * SIGMA ** 2))
      for i in range(WINDOW_SIZE)]
_gsum = sum(_g)
GAUSS_1D = [v / _gsum for v in _g]

C1 = 0.01 ** 2
C2 = 0.03 ** 2

_LANE = 128
_SUBLANE = 8
_WT = 128          # width-block size of the block-banded row pass (lane tile)
_HALO = 16         # sublane-aligned carried column halo (>= 2*PAD)


def _round_up(x, m):
    return ((x + m - 1) // m) * m


# --------------------------- band matrices -----------------------------------
def _row_band_matrices():
    """(Wt,Wt) band matrices for the block-banded width pass.

    Output column c of width-block wb receives input column j of width-block
    wb+s (s in {-1,0,+1}) with weight g[j - c + s*Wt + PAD]; zero padding of
    the PyTorch conv is implicit (missing neighbour blocks contribute zero).
    """
    g = jnp.asarray(GAUSS_1D, dtype=jnp.float32)
    j = jnp.arange(_WT)[:, None]
    c = jnp.arange(_WT)[None, :]

    def band(shift):
        d = j - c + shift + PAD
        ok = (d >= 0) & (d < WINDOW_SIZE)
        return jnp.where(ok, g[jnp.clip(d, 0, WINDOW_SIZE - 1)], 0.0)

    return band(0), band(-_WT), band(_WT)     # diag, prev-block, next-block


def _col_band_matrix(TH):
    """(TH, TH+HALO) band for the fused column pass.

    Column j of the RHS corresponds to global image row h*TH - HALO + j
    (rows 0..HALO-1 are the carried halo from the previous tile, rows
    HALO..TH+HALO-1 are the current tile).  Output row i corresponds to global
    output row h*TH - PAD + i, hence weight g[j - (HALO - 2*PAD) - i].
    """
    g = jnp.asarray(GAUSS_1D, dtype=jnp.float32)
    i = jnp.arange(TH)[:, None]
    j = jnp.arange(TH + _HALO)[None, :]
    d = j - (_HALO - 2 * PAD) - i
    ok = (d >= 0) & (d < WINDOW_SIZE)
    return jnp.where(ok, g[jnp.clip(d, 0, WINDOW_SIZE - 1)], 0.0)


# --------------------------- tile sizing --------------------------------------
def _vmem_bytes(th, W, Wo, itemsize):
    """Tightened per-step VMEM working-set estimate."""
    inputs = 2 * 2 * th * W * itemsize                        # 2 imgs, double buffered
    weights = 2 * (3 * _WT * _WT + th * (th + _HALO)) * 4     # band constants
    scratch = (5 * th * Wo + (th + _HALO) * 5 * Wo) * 4       # products + colin
    temps = 18 * th * Wo * 4                                  # padded x, products,
                                                              # conv result, SSIM temps
    out = 2 * _SUBLANE * _LANE * 4
    return inputs + weights + scratch + temps + out


def _choose_tile_h(H, W, Wo, itemsize, budget):
    th_one = max(_HALO, _round_up(H, _SUBLANE))
    if th_one <= 256 and _vmem_bytes(th_one, W, Wo, itemsize) <= budget:
        return th_one                       # whole image height in one tile
    for th in (240, 112, 48, 16):           # th + HALO hits the MXU K tile
        if _vmem_bytes(th, W, Wo, itemsize) <= budget:
            return th
    return 16


# --------------------------- main entry point ---------------------------------
def ssim_pallas(img1, img2, size_average=True):
    """SSIM(img1, img2) with window_size=11, sigma=1.5 (module defaults)."""
    assert size_average, "only size_average=True (module default) is implemented"
    B, C, H, W = img1.shape
    nW = -(-W // _WT)
    Wo = nW * _WT                                   # lane-dense working width
    in_itemsize = jnp.dtype(img1.dtype).itemsize

    try:
        phys_vmem = int(pltpu.get_tpu_info().vmem_capacity_bytes)
    except Exception:
        phys_vmem = 64 * 1024 * 1024                # v7x-safe fallback
    budget = max(8 << 20, (phys_vmem * 3) // 8)

    TH = _choose_tile_h(H, W, Wo, in_itemsize, budget)
    nH = -(-H // TH)
    # The epilogue (halo flush) step is only needed when the last PAD output
    # rows are not already covered by the last real tile.
    need_epi = (nH * TH - H) < PAD
    n_steps = nH + (1 if need_epi else 0)
    last_partial = (H % TH) != 0

    g_diag, g_lo, g_hi = _row_band_matrices()
    g_col = _col_band_matrix(TH)

    def kernel(img1_ref, img2_ref, gdiag_ref, glo_ref, ghi_ref, gcol_ref,
               out_ref, stacked_ref, colin_ref):
        h = pl.program_id(2)

        @pl.when(h == 0)
        def _init():                      # new (b, c) plane
            out_ref[...] = jnp.zeros_like(out_ref)
            colin_ref[0:_HALO, :] = jnp.zeros((_HALO, 5 * Wo), jnp.float32)

        def ssim_accum(conv_all):
            mu1 = conv_all[:, 0 * Wo:1 * Wo]
            mu2 = conv_all[:, 1 * Wo:2 * Wo]
            e11 = conv_all[:, 2 * Wo:3 * Wo]
            e22 = conv_all[:, 3 * Wo:4 * Wo]
            e12 = conv_all[:, 4 * Wo:5 * Wo]
            mu1_sq = mu1 * mu1
            mu2_sq = mu2 * mu2
            mu1_mu2 = mu1 * mu2
            s1 = e11 - mu1_sq
            s2 = e22 - mu2_sq
            s12 = e12 - mu1_mu2
            ssim_map = ((2.0 * mu1_mu2 + C1) * (2.0 * s12 + C2)) / (
                (mu1_sq + mu2_sq + C1) * (s1 + s2 + C2))

            # mask lane padding / out-of-range output rows (they'd evaluate to 1)
            out_rows = (h * TH - PAD) + lax.broadcasted_iota(jnp.int32, (TH, Wo), 0)
            cols = lax.broadcasted_iota(jnp.int32, (TH, Wo), 1)
            valid = (out_rows >= 0) & (out_rows < H) & (cols < W)
            contrib = jnp.where(valid, ssim_map, 0.0)

            # pairwise tree of independent (8,128) partial sums (short VPU chains)
            blocks = [contrib[i0:i0 + _SUBLANE, j0:j0 + _LANE]
                      for i0 in range(0, TH, _SUBLANE)
                      for j0 in range(0, Wo, _LANE)]
            while len(blocks) > 1:
                nxt = [blocks[a] + blocks[a + 1]
                       for a in range(0, len(blocks) - 1, 2)]
                if len(blocks) % 2:
                    nxt.append(blocks[-1])
                blocks = nxt
            out_ref[...] += blocks[0]

        def main_step():
            x1 = img1_ref[...].astype(jnp.float32)
            x2 = img2_ref[...].astype(jnp.float32)
            if last_partial:              # only needed when the last tile is partial
                in_rows = h * TH + lax.broadcasted_iota(jnp.int32, (TH, W), 0)
                ok = in_rows < H
                x1 = jnp.where(ok, x1, 0.0)
                x2 = jnp.where(ok, x2, 0.0)
            if Wo > W:                    # lane padding (zeros == conv zero padding)
                zpad = jnp.zeros((TH, Wo - W), jnp.float32)
                x1 = jnp.concatenate([x1, zpad], axis=1)
                x2 = jnp.concatenate([x2, zpad], axis=1)

            # the 5 products, stacked along sublanes in a VMEM scratch
            stacked_ref[0 * TH:1 * TH, :] = x1
            stacked_ref[1 * TH:2 * TH, :] = x2
            stacked_ref[2 * TH:3 * TH, :] = x1 * x1
            stacked_ref[3 * TH:4 * TH, :] = x2 * x2
            stacked_ref[4 * TH:5 * TH, :] = x1 * x2

            gdiag = gdiag_ref[...]
            glo = glo_ref[...] if nW > 1 else None
            ghi = ghi_ref[...] if nW > 1 else None

            # block-banded row (width) pass; results land directly in the
            # column-pass RHS layout: colin[HALO:, p*Wo + wb*Wt : ...]
            for wb in range(nW):
                acc = jnp.dot(stacked_ref[:, wb * _WT:(wb + 1) * _WT], gdiag,
                              preferred_element_type=jnp.float32)
                if wb > 0:
                    acc = acc + jnp.dot(stacked_ref[:, (wb - 1) * _WT:wb * _WT],
                                        glo, preferred_element_type=jnp.float32)
                if wb < nW - 1:
                    acc = acc + jnp.dot(stacked_ref[:, (wb + 1) * _WT:(wb + 2) * _WT],
                                        ghi, preferred_element_type=jnp.float32)
                for p in range(5):
                    colin_ref[_HALO:_HALO + TH,
                              p * Wo + wb * _WT:p * Wo + (wb + 1) * _WT] = \
                        acc[p * TH:(p + 1) * TH, :]

            # fused column (height) pass: one (TH, TH+HALO) @ (TH+HALO, 5*Wo) matmul
            conv_all = jnp.dot(gcol_ref[...], colin_ref[...],
                               preferred_element_type=jnp.float32)
            ssim_accum(conv_all)

            # carry: last HALO rows of the current row-pass output (aligned copy)
            colin_ref[0:_HALO, :] = colin_ref[TH:TH + _HALO, :]

        def epi_step():
            # bottom-halo flush: only the carried rows contribute
            conv_all = jnp.dot(gcol_ref[...][:, 0:_HALO], colin_ref[0:_HALO, :],
                               preferred_element_type=jnp.float32)
            ssim_accum(conv_all)

        if need_epi:
            pl.when(h < nH)(main_step)
            pl.when(h == nH)(epi_step)
        else:
            main_step()

    img_spec = pl.BlockSpec(
        (None, None, TH, W),
        lambda b, c, h: (b, c, jnp.minimum(h, nH - 1), 0))

    def const_spec(shape):
        return pl.BlockSpec(shape, lambda b, c, h: (0, 0))

    est = _vmem_bytes(TH, W, Wo, in_itemsize)
    vmem_limit = int(min(max(est + est // 2, 32 << 20), (phys_vmem * 3) // 4))

    partial = pl.pallas_call(
        kernel,
        out_shape=jax.ShapeDtypeStruct((B, C, _SUBLANE, _LANE), jnp.float32),
        grid_spec=pltpu.PrefetchScalarGridSpec(
            num_scalar_prefetch=0,
            grid=(B, C, n_steps),
            in_specs=[img_spec, img_spec,
                      const_spec((_WT, _WT)),
                      const_spec((_WT, _WT)),
                      const_spec((_WT, _WT)),
                      const_spec((TH, TH + _HALO))],
            out_specs=pl.BlockSpec((None, None, _SUBLANE, _LANE),
                                   lambda b, c, h: (b, c, 0, 0)),
            scratch_shapes=[pltpu.VMEM((5 * TH, Wo), jnp.float32),
                            pltpu.VMEM((TH + _HALO, 5 * Wo), jnp.float32)],
        ),
        compiler_params=pltpu.CompilerParams(
            dimension_semantics=("parallel", "parallel", "arbitrary"),
            vmem_limit_bytes=vmem_limit),
    )(img1, img2, g_diag, g_lo, g_hi, g_col)

    # final cross-lane reduce + mean (size_average=True)
    return jnp.sum(partial) / (B * C * H * W)


# ---------------- pure-JAX reference (for verification only) ----------------
def _ssim_ref(img1, img2):
    B, C, H, W = img1.shape
    g = jnp.asarray(GAUSS_1D, dtype=jnp.float32)
    win2d = jnp.outer(g, g)                                    # (11, 11)
    window = jnp.broadcast_to(win2d, (C, 1, WINDOW_SIZE, WINDOW_SIZE))

    def conv(x):
        return lax.conv_general_dilated(
            x, window, window_strides=(1, 1),
            padding=[(PAD, PAD), (PAD, PAD)],
            dimension_numbers=("NCHW", "OIHW", "NCHW"),
            feature_group_count=C,
            precision=lax.Precision.HIGHEST)

    mu1, mu2 = conv(img1), conv(img2)
    mu1_sq, mu2_sq, mu1_mu2 = mu1 * mu1, mu2 * mu2, mu1 * mu2
    s1 = conv(img1 * img1) - mu1_sq
    s2 = conv(img2 * img2) - mu2_sq
    s12 = conv(img1 * img2) - mu1_mu2
    m = ((2 * mu1_mu2 + C1) * (2 * s12 + C2)) / (
        (mu1_sq + mu2_sq + C1) * (s1 + s2 + C2))
    return m.mean()


if __name__ == "__main__":
    key = jax.random.PRNGKey(0)
    k1, k2 = jax.random.split(key)
    B, C, H, W = 2, 4, 16, 16
    img1 = jax.random.uniform(k1, (B, C, H, W), dtype=jnp.float32)
    img2 = jax.random.uniform(k2, (B, C, H, W), dtype=jnp.float32)

    out = jax.block_until_ready(ssim_pallas(img1, img2))
    ref = jax.block_until_ready(_ssim_ref(img1, img2))
    assert jnp.allclose(out, ref, rtol=1e-4, atol=2e-5), (out, ref)

    print("KERNEL_OK")
</pallas_src>

<mosaic_0001>
module attributes {stable_mosaic.version = 11 : i64} {
  func.func @kernel(%arg0: i32, %arg1: i32, %arg2: i32, %arg3: memref<1x1x16x16xf32, #tpu.memory_space<vmem>>, %arg4: memref<1x1x16x16xf32, #tpu.memory_space<vmem>>, %arg5: memref<128x128xf32, #tpu.memory_space<vmem>>, %arg6: memref<128x128xf32, #tpu.memory_space<vmem>>, %arg7: memref<128x128xf32, #tpu.memory_space<vmem>>, %arg8: memref<16x32xf32, #tpu.memory_space<vmem>>, %arg9: memref<1x1x8x128xf32, #tpu.memory_space<vmem>>, %arg10: memref<80x128xf32, #tpu.memory_space<vmem>>, %arg11: memref<32x640xf32, #tpu.memory_space<vmem>>) attributes {dimension_semantics = [#tpu.dimension_semantics<parallel>, #tpu.dimension_semantics<parallel>, #tpu.dimension_semantics<arbitrary>], iteration_bounds = array<i64: 2, 4, 2>, scalar_prefetch = 0 : i64, scratch_operands = 2 : i64, tpu.core_type = #tpu.core_type<tc>, window_params = [{transform_indices = @transform_0, window_bounds = array<i64: 1, 1, 16, 16>}, {transform_indices = @transform_1, window_bounds = array<i64: 1, 1, 16, 16>}, {pipeline_mode = #tpu.pipeline_mode<synchronous>, transform_indices = @transform_2, window_bounds = array<i64: 128, 128>}, {pipeline_mode = #tpu.pipeline_mode<synchronous>, transform_indices = @transform_3, window_bounds = array<i64: 128, 128>}, {pipeline_mode = #tpu.pipeline_mode<synchronous>, transform_indices = @transform_4, window_bounds = array<i64: 128, 128>}, {pipeline_mode = #tpu.pipeline_mode<synchronous>, transform_indices = @transform_5, window_bounds = array<i64: 16, 32>}, {transform_indices = @transform_6, window_bounds = array<i64: 1, 1, 8, 128>}]} {
    %c0_i32 = arith.constant 0 : i32
    %0 = arith.cmpi eq, %arg2, %c0_i32 : i32
    %1 = arith.extui %0 : i1 to i32
    %c0_i32_0 = arith.constant 0 : i32
    %2 = arith.cmpi ne, %1, %c0_i32_0 : i32
    scf.if %2 {
      %cst = arith.constant 0.000000e+00 : f32
      %9 = vector.broadcast %cst : f32 to vector<8x128xf32>
      %c0 = arith.constant 0 : index
      %c0_4 = arith.constant 0 : index
      %c0_5 = arith.constant 0 : index
      %c0_6 = arith.constant 0 : index
      %10 = vector.load %arg9[%c0, %c0_4, %c0_5, %c0_6] : memref<1x1x8x128xf32, #tpu.memory_space<vmem>>, vector<1x1x8x128xf32>
      %11 = vector.shape_cast %10 : vector<1x1x8x128xf32> to vector<8x128xf32>
      %12 = vector.shape_cast %9 : vector<8x128xf32> to vector<1x1x8x128xf32>
      tpu.vector_store %arg9[%c0, %c0_4, %c0_5, %c0_6], %12 {strides = array<i32>} : memref<1x1x8x128xf32, #tpu.memory_space<vmem>>, vector<1x1x8x128xf32>,
      %cst_7 = arith.constant 0.000000e+00 : f32
      %13 = vector.broadcast %cst_7 : f32 to vector<16x640xf32>
      %c0_8 = arith.constant 0 : index
      %c0_9 = arith.constant 0 : index
      %14 = vector.load %arg11[%c0_8, %c0_9] : memref<32x640xf32, #tpu.memory_space<vmem>>, vector<16x640xf32>
      tpu.vector_store %arg11[%c0_8, %c0_9], %13 {strides = array<i32>} : memref<32x640xf32, #tpu.memory_space<vmem>>, vector<16x640xf32>,
    } else {
    }
    %c1_i32 = arith.constant 1 : i32
    %3 = arith.cmpi slt, %arg2, %c1_i32 : i32
    %4 = arith.extui %3 : i1 to i32
    %c0_i32_1 = arith.constant 0 : i32
    %5 = arith.cmpi ne, %4, %c0_i32_1 : i32
    scf.if %5 {
      %c0 = arith.constant 0 : index
      %c0_4 = arith.constant 0 : index
      %c0_5 = arith.constant 0 : index
      %c0_6 = arith.constant 0 : index
      %9 = vector.load %arg3[%c0, %c0_4, %c0_5, %c0_6] : memref<1x1x16x16xf32, #tpu.memory_space<vmem>>, vector<1x1x16x16xf32>
      %10 = vector.shape_cast %9 : vector<1x1x16x16xf32> to vector<16x16xf32>
      %c0_7 = arith.constant 0 : index
      %c0_8 = arith.constant 0 : index
      %c0_9 = arith.constant 0 : index
      %c0_10 = arith.constant 0 : index
      %11 = vector.load %arg4[%c0_7, %c0_8, %c0_9, %c0_10] : memref<1x1x16x16xf32, #tpu.memory_space<vmem>>, vector<1x1x16x16xf32>
      %12 = vector.shape_cast %11 : vector<1x1x16x16xf32> to vector<16x16xf32>
      %cst = arith.constant 0.000000e+00 : f32
      %13 = vector.broadcast %cst : f32 to vector<16x112xf32>
      %14 = tpu.concatenate %10, %13 in 1 : vector<16x16xf32>, vector<16x112xf32> -> vector<16x128xf32>
      %15 = tpu.concatenate %12, %13 in 1 : vector<16x16xf32>, vector<16x112xf32> -> vector<16x128xf32>
      %c0_11 = arith.constant 0 : index
      %c0_12 = arith.constant 0 : index
      %16 = vector.load %arg10[%c0_11, %c0_12] : memref<80x128xf32, #tpu.memory_space<vmem>>, vector<16x128xf32>
      tpu.vector_store %arg10[%c0_11, %c0_12], %14 {strides = array<i32>} : memref<80x128xf32, #tpu.memory_space<vmem>>, vector<16x128xf32>,
      %c16 = arith.constant 16 : index
      %c0_13 = arith.constant 0 : index
      %17 = vector.load %arg10[%c16, %c0_13] : memref<80x128xf32, #tpu.memory_space<vmem>>, vector<16x128xf32>
      tpu.vector_store %arg10[%c16, %c0_13], %15 {strides = array<i32>} : memref<80x128xf32, #tpu.memory_space<vmem>>, vector<16x128xf32>,
      %18 = arith.mulf %14, %14 : vector<16x128xf32>
      %c32 = arith.constant 32 : index
      %c0_14 = arith.constant 0 : index
      %19 = vector.load %arg10[%c32, %c0_14] : memref<80x128xf32, #tpu.memory_space<vmem>>, vector<16x128xf32>
      tpu.vector_store %arg10[%c32, %c0_14], %18 {strides = array<i32>} : memref<80x128xf32, #tpu.memory_space<vmem>>, vector<16x128xf32>,
      %20 = arith.mulf %15, %15 : vector<16x128xf32>
      %c48 = arith.constant 48 : index
      %c0_15 = arith.constant 0 : index
      %21 = vector.load %arg10[%c48, %c0_15] : memref<80x128xf32, #tpu.memory_space<vmem>>, vector<16x128xf32>
      tpu.vector_store %arg10[%c48, %c0_15], %20 {strides = array<i32>} : memref<80x128xf32, #tpu.memory_space<vmem>>, vector<16x128xf32>,
      %22 = arith.mulf %14, %15 : vector<16x128xf32>
      %c64 = arith.constant 64 : index
      %c0_16 = arith.constant 0 : index
      %23 = vector.load %arg10[%c64, %c0_16] : memref<80x128xf32, #tpu.memory_space<vmem>>, vector<16x128xf32>
      tpu.vector_store %arg10[%c64, %c0_16], %22 {strides = array<i32>} : memref<80x128xf32, #tpu.memory_space<vmem>>, vector<16x128xf32>,
      %c0_17 = arith.constant 0 : index
      %c0_18 = arith.constant 0 : index
      %24 = vector.load %arg5[%c0_17, %c0_18] : memref<128x128xf32, #tpu.memory_space<vmem>>, vector<128x128xf32>
      %c0_19 = arith.constant 0 : index
      %c0_20 = arith.constant 0 : index
      %25 = vector.load %arg10[%c0_19, %c0_20] : memref<80x128xf32, #tpu.memory_space<vmem>>, vector<80x128xf32>
      %cst_21 = arith.constant dense<0.000000e+00> : vector<80x128xf32>
      %26 = tpu.matmul %25, %24, %cst_21 {dimension_numbers = #tpu.dot_dimension_numbers<[1], [0], [0], [1], [0, 0, 1, 1], [], []>} : vector<80x128xf32>, vector<128x128xf32>, vector<80x128xf32> -> vector<80x128xf32>
      %27 = vector.extract_strided_slice %26 {offsets = [0, 0], sizes = [16, 128], strides = [1, 1]} : vector<80x128xf32> to vector<16x128xf32>
      %c16_22 = arith.constant 16 : index
      %c0_23 = arith.constant 0 : index
      %28 = vector.load %arg11[%c16_22, %c0_23] : memref<32x640xf32, #tpu.memory_space<vmem>>, vector<16x128xf32>
      tpu.vector_store %arg11[%c16_22, %c0_23], %27 {strides = array<i32>} : memref<32x640xf32, #tpu.memory_space<vmem>>, vector<16x128xf32>,
      %29 = vector.extract_strided_slice %26 {offsets = [16, 0], sizes = [16, 128], strides = [1, 1]} : vector<80x128xf32> to vector<16x128xf32>
      %c16_24 = arith.constant 16 : index
      %c128 = arith.constant 128 : index
      %30 = vector.load %arg11[%c16_24, %c128] : memref<32x640xf32, #tpu.memory_space<vmem>>, vector<16x128xf32>
      tpu.vector_store %arg11[%c16_24, %c128], %29 {strides = array<i32>} : memref<32x640xf32, #tpu.memory_space<vmem>>, vector<16x128xf32>,
      %31 = vector.extract_strided_slice %26 {offsets = [32, 0], sizes = [16, 128], strides = [1, 1]} : vector<80x128xf32> to vector<16x128xf32>
      %c16_25 = arith.constant 16 : index
      %c256 = arith.constant 256 : index
      %32 = vector.load %arg11[%c16_25, %c256] : memref<32x640xf32, #tpu.memory_space<vmem>>, vector<16x128xf32>
      tpu.vector_store %arg11[%c16_25, %c256], %31 {strides = array<i32>} : memref<32x640xf32, #tpu.memory_space<vmem>>, vector<16x128xf32>,
      %33 = vector.extract_strided_slice %26 {offsets = [48, 0], sizes = [16, 128], strides = [1, 1]} : vector<80x128xf32> to vector<16x128xf32>
      %c16_26 = arith.constant 16 : index
      %c384 = arith.constant 384 : index
      %34 = vector.load %arg11[%c16_26, %c384] : memref<32x640xf32, #tpu.memory_space<vmem>>, vector<16x128xf32>
      tpu.vector_store %arg11[%c16_26, %c384], %33 {strides = array<i32>} : memref<32x640xf32, #tpu.memory_space<vmem>>, vector<16x128xf32>,
      %35 = vector.extract_strided_slice %26 {offsets = [64, 0], sizes = [16, 128], strides = [1, 1]} : vector<80x128xf32> to vector<16x128xf32>
      %c16_27 = arith.constant 16 : index
      %c512 = arith.constant 512 : index
      %36 = vector.load %arg11[%c16_27, %c512] : memref<32x640xf32, #tpu.memory_space<vmem>>, vector<16x128xf32>
      tpu.vector_store %arg11[%c16_27, %c512], %35 {strides = array<i32>} : memref<32x640xf32, #tpu.memory_space<vmem>>, vector<16x128xf32>,
      %c0_28 = arith.constant 0 : index
      %c0_29 = arith.constant 0 : index
      %37 = vector.load %arg8[%c0_28, %c0_29] : memref<16x32xf32, #tpu.memory_space<vmem>>, vector<16x32xf32>
      %c0_30 = arith.constant 0 : index
      %c0_31 = arith.constant 0 : index
      %38 = vector.load %arg11[%c0_30, %c0_31] : memref<32x640xf32, #tpu.memory_space<vmem>>, vector<32x640xf32>
      %cst_32 = arith.constant dense<0.000000e+00> : vector<16x640xf32>
      %39 = tpu.matmul %37, %38, %cst_32 {dimension_numbers = #tpu.dot_dimension_numbers<[1], [0], [0], [1], [0, 0, 1, 1], [], []>} : vector<16x32xf32>, vector<32x640xf32>, vector<16x640xf32> -> vector<16x640xf32>
      %40 = vector.extract_strided_slice %39 {offsets = [0, 0], sizes = [16, 128], strides = [1, 1]} : vector<16x640xf32> to vector<16x128xf32>
      %41 = vector.extract_strided_slice %39 {offsets = [0, 128], sizes = [16, 128], strides = [1, 1]} : vector<16x640xf32> to vector<16x128xf32>
      %42 = vector.extract_strided_slice %39 {offsets = [0, 256], sizes = [16, 128], strides = [1, 1]} : vector<16x640xf32> to vector<16x128xf32>
      %43 = vector.extract_strided_slice %39 {offsets = [0, 384], sizes = [16, 128], strides = [1, 1]} : vector<16x640xf32> to vector<16x128xf32>
      %44 = vector.extract_strided_slice %39 {offsets = [0, 512], sizes = [16, 128], strides = [1, 1]} : vector<16x640xf32> to vector<16x128xf32>
      %45 = arith.mulf %40, %40 : vector<16x128xf32>
      %46 = arith.mulf %41, %41 : vector<16x128xf32>
      %47 = arith.mulf %40, %41 : vector<16x128xf32>
      %48 = arith.subf %42, %45 : vector<16x128xf32>
      %49 = arith.subf %43, %46 : vector<16x128xf32>
      %50 = arith.subf %44, %47 : vector<16x128xf32>
      %cst_33 = arith.constant 2.000000e+00 : f32
      %51 = vector.broadcast %cst_33 : f32 to vector<16x128xf32>
      %52 = arith.mulf %51, %47 : vector<16x128xf32>
      %cst_34 = arith.constant 9.99999974E-5 : f32
      %53 = vector.broadcast %cst_34 : f32 to vector<16x128xf32>
      %54 = arith.addf %52, %53 : vector<16x128xf32>
      %cst_35 = arith.constant 2.000000e+00 : f32
      %55 = vector.broadcast %cst_35 : f32 to vector<16x128xf32>
      %56 = arith.mulf %55, %50 : vector<16x128xf32>
      %cst_36 = arith.constant 8.99999984E-4 : f32
      %57 = vector.broadcast %cst_36 : f32 to vector<16x128xf32>
      %58 = arith.addf %56, %57 : vector<16x128xf32>
      %59 = arith.mulf %54, %58 : vector<16x128xf32>
      %60 = arith.addf %45, %46 : vector<16x128xf32>
      %cst_37 = arith.constant 9.99999974E-5 : f32
      %61 = vector.broadcast %cst_37 : f32 to vector<16x128xf32>
      %62 = arith.addf %60, %61 : vector<16x128xf32>
      %63 = arith.addf %48, %49 : vector<16x128xf32>
      %cst_38 = arith.constant 8.99999984E-4 : f32
      %64 = vector.broadcast %cst_38 : f32 to vector<16x128xf32>
      %65 = arith.addf %63, %64 : vector<16x128xf32>
      %66 = arith.mulf %62, %65 : vector<16x128xf32>
      %67 = arith.divf %59, %66 : vector<16x128xf32>
      %c16_i32 = arith.constant 16 : i32
      %68 = arith.muli %arg2, %c16_i32 : i32
      %c5_i32 = arith.constant 5 : i32
      %69 = arith.subi %68, %c5_i32 : i32
      %70 = tpu.iota {dimensions = array<i32: 0>} : vector<16x128xi32>
      %71 = vector.broadcast %69 : i32 to vector<16x128xi32>
      %72 = arith.addi %71, %70 : vector<16x128xi32>
      %73 = tpu.iota {dimensions = array<i32: 1>} : vector<16x128xi32>
      %c0_i32_39 = arith.constant 0 : i32
      %74 = vector.broadcast %c0_i32_39 : i32 to vector<16x128xi32>
      %75 = arith.cmpi sge, %72, %74 : vector<16x128xi32>
      %c16_i32_40 = arith.constant 16 : i32
      %76 = vector.broadcast %c16_i32_40 : i32 to vector<16x128xi32>
      %77 = arith.cmpi slt, %72, %76 : vector<16x128xi32>
      %78 = arith.andi %75, %77 : vector<16x128xi1>
      %c16_i32_41 = arith.constant 16 : i32
      %79 = vector.broadcast %c16_i32_41 : i32 to vector<16x128xi32>
      %80 = arith.cmpi slt, %73, %79 : vector<16x128xi32>
      %81 = arith.andi %78, %80 : vector<16x128xi1>
      %cst_42 = arith.constant 0.000000e+00 : f32
      %82 = vector.broadcast %cst_42 : f32 to vector<16x128xf32>
      %83 = arith.select %81, %67, %82 : vector<16x128xi1>, vector<16x128xf32>
      %84 = vector.extract_strided_slice %83 {offsets = [0, 0], sizes = [8, 128], strides = [1, 1]} : vector<16x128xf32> to vector<8x128xf32>
      %85 = vector.extract_strided_slice %83 {offsets = [8, 0], sizes = [8, 128], strides = [1, 1]} : vector<16x128xf32> to vector<8x128xf32>
      %86 = arith.addf %84, %85 : vector<8x128xf32>
      %c0_43 = arith.constant 0 : index
      %c0_44 = arith.constant 0 : index
      %c0_45 = arith.constant 0 : index
      %c0_46 = arith.constant 0 : index
      %87 = vector.load %arg9[%c0_43, %c0_44, %c0_45, %c0_46] : memref<1x1x8x128xf32, #tpu.memory_space<vmem>>, vector<1x1x8x128xf32>
      %88 = vector.shape_cast %87 : vector<1x1x8x128xf32> to vector<8x128xf32>
      %89 = arith.addf %88, %86 : vector<8x128xf32>
      %c0_47 = arith.constant 0 : index
      %c0_48 = arith.constant 0 : index
      %c0_49 = arith.constant 0 : index
      %c0_50 = arith.constant 0 : index
      %90 = vector.load %arg9[%c0_47, %c0_48, %c0_49, %c0_50] : memref<1x1x8x128xf32, #tpu.memory_space<vmem>>, vector<1x1x8x128xf32>
      %91 = vector.shape_cast %90 : vector<1x1x8x128xf32> to vector<8x128xf32>
      %92 = vector.shape_cast %89 : vector<8x128xf32> to vector<1x1x8x128xf32>
      tpu.vector_store %arg9[%c0_47, %c0_48, %c0_49, %c0_50], %92 {strides = array<i32>} : memref<1x1x8x128xf32, #tpu.memory_space<vmem>>, vector<1x1x8x128xf32>,
      %c16_51 = arith.constant 16 : index
      %c0_52 = arith.constant 0 : index
      %93 = vector.load %arg11[%c16_51, %c0_52] : memref<32x640xf32, #tpu.memory_space<vmem>>, vector<16x640xf32>
      %c0_53 = arith.constant 0 : index
      %c0_54 = arith.constant 0 : index
      %94 = vector.load %arg11[%c0_53, %c0_54] : memref<32x640xf32, #tpu.memory_space<vmem>>, vector<16x640xf32>
      tpu.vector_store %arg11[%c0_53, %c0_54], %93 {strides = array<i32>} : memref<32x640xf32, #tpu.memory_space<vmem>>, vector<16x640xf32>,
    } else {
    }
    %c1_i32_2 = arith.constant 1 : i32
    %6 = arith.cmpi eq, %arg2, %c1_i32_2 : i32
    %7 = arith.extui %6 : i1 to i32
    %c0_i32_3 = arith.constant 0 : i32
    %8 = arith.cmpi ne, %7, %c0_i32_3 : i32
    scf.if %8 {
      %c0 = arith.constant 0 : index
      %c0_4 = arith.constant 0 : index
      %9 = vector.load %arg8[%c0, %c0_4] : memref<16x32xf32, #tpu.memory_space<vmem>>, vector<16x32xf32>
      %10 = vector.extract_strided_slice %9 {offsets = [0, 0], sizes = [16, 16], strides = [1, 1]} : vector<16x32xf32> to vector<16x16xf32>
      %c0_5 = arith.constant 0 : index
      %c0_6 = arith.constant 0 : index
      %11 = vector.load %arg11[%c0_5, %c0_6] : memref<32x640xf32, #tpu.memory_space<vmem>>, vector<16x640xf32>
      %cst = arith.constant dense<0.000000e+00> : vector<16x640xf32>
      %12 = tpu.matmul %10, %11, %cst {dimension_numbers = #tpu.dot_dimension_numbers<[1], [0], [0], [1], [0, 0, 1, 1], [], []>} : vector<16x16xf32>, vector<16x640xf32>, vector<16x640xf32> -> vector<16x640xf32>
      %13 = vector.extract_strided_slice %12 {offsets = [0, 0], sizes = [16, 128], strides = [1, 1]} : vector<16x640xf32> to vector<16x128xf32>
      %14 = vector.extract_strided_slice %12 {offsets = [0, 128], sizes = [16, 128], strides = [1, 1]} : vector<16x640xf32> to vector<16x128xf32>
      %15 = vector.extract_strided_slice %12 {offsets = [0, 256], sizes = [16, 128], strides = [1, 1]} : vector<16x640xf32> to vector<16x128xf32>
      %16 = vector.extract_strided_slice %12 {offsets = [0, 384], sizes = [16, 128], strides = [1, 1]} : vector<16x640xf32> to vector<16x128xf32>
      %17 = vector.extract_strided_slice %12 {offsets = [0, 512], sizes = [16, 128], strides = [1, 1]} : vector<16x640xf32> to vector<16x128xf32>
      %18 = arith.mulf %13, %13 : vector<16x128xf32>
      %19 = arith.mulf %14, %14 : vector<16x128xf32>
      %20 = arith.mulf %13, %14 : vector<16x128xf32>
      %21 = arith.subf %15, %18 : vector<16x128xf32>
      %22 = arith.subf %16, %19 : vector<16x128xf32>
      %23 = arith.subf %17, %20 : vector<16x128xf32>
      %cst_7 = arith.constant 2.000000e+00 : f32
      %24 = vector.broadcast %cst_7 : f32 to vector<16x128xf32>
      %25 = arith.mulf %24, %20 : vector<16x128xf32>
      %cst_8 = arith.constant 9.99999974E-5 : f32
      %26 = vector.broadcast %cst_8 : f32 to vector<16x128xf32>
      %27 = arith.addf %25, %26 : vector<16x128xf32>
      %cst_9 = arith.constant 2.000000e+00 : f32
      %28 = vector.broadcast %cst_9 : f32 to vector<16x128xf32>
      %29 = arith.mulf %28, %23 : vector<16x128xf32>
      %cst_10 = arith.constant 8.99999984E-4 : f32
      %30 = vector.broadcast %cst_10 : f32 to vector<16x128xf32>
      %31 = arith.addf %29, %30 : vector<16x128xf32>
      %32 = arith.mulf %27, %31 : vector<16x128xf32>
      %33 = arith.addf %18, %19 : vector<16x128xf32>
      %cst_11 = arith.constant 9.99999974E-5 : f32
      %34 = vector.broadcast %cst_11 : f32 to vector<16x128xf32>
      %35 = arith.addf %33, %34 : vector<16x128xf32>
      %36 = arith.addf %21, %22 : vector<16x128xf32>
      %cst_12 = arith.constant 8.99999984E-4 : f32
      %37 = vector.broadcast %cst_12 : f32 to vector<16x128xf32>
      %38 = arith.addf %36, %37 : vector<16x128xf32>
      %39 = arith.mulf %35, %38 : vector<16x128xf32>
      %40 = arith.divf %32, %39 : vector<16x128xf32>
      %c16_i32 = arith.constant 16 : i32
      %41 = arith.muli %arg2, %c16_i32 : i32
      %c5_i32 = arith.constant 5 : i32
      %42 = arith.subi %41, %c5_i32 : i32
      %43 = tpu.iota {dimensions = array<i32: 0>} : vector<16x128xi32>
      %44 = vector.broadcast %42 : i32 to vector<16x128xi32>
      %45 = arith.addi %44, %43 : vector<16x128xi32>
      %46 = tpu.iota {dimensions = array<i32: 1>} : vector<16x128xi32>
      %c0_i32_13 = arith.constant 0 : i32
      %47 = vector.broadcast %c0_i32_13 : i32 to vector<16x128xi32>
      %48 = arith.cmpi sge, %45, %47 : vector<16x128xi32>
      %c16_i32_14 = arith.constant 16 : i32
      %49 = vector.broadcast %c16_i32_14 : i32 to vector<16x128xi32>
      %50 = arith.cmpi slt, %45, %49 : vector<16x128xi32>
      %51 = arith.andi %48, %50 : vector<16x128xi1>
      %c16_i32_15 = arith.constant 16 : i32
      %52 = vector.broadcast %c16_i32_15 : i32 to vector<16x128xi32>
      %53 = arith.cmpi slt, %46, %52 : vector<16x128xi32>
      %54 = arith.andi %51, %53 : vector<16x128xi1>
      %cst_16 = arith.constant 0.000000e+00 : f32
      %55 = vector.broadcast %cst_16 : f32 to vector<16x128xf32>
      %56 = arith.select %54, %40, %55 : vector<16x128xi1>, vector<16x128xf32>
      %57 = vector.extract_strided_slice %56 {offsets = [0, 0], sizes = [8, 128], strides = [1, 1]} : vector<16x128xf32> to vector<8x128xf32>
      %58 = vector.extract_strided_slice %56 {offsets = [8, 0], sizes = [8, 128], strides = [1, 1]} : vector<16x128xf32> to vector<8x128xf32>
      %59 = arith.addf %57, %58 : vector<8x128xf32>
      %c0_17 = arith.constant 0 : index
      %c0_18 = arith.constant 0 : index
      %c0_19 = arith.constant 0 : index
      %c0_20 = arith.constant 0 : index
      %60 = vector.load %arg9[%c0_17, %c0_18, %c0_19, %c0_20] : memref<1x1x8x128xf32, #tpu.memory_space<vmem>>, vector<1x1x8x128xf32>
      %61 = vector.shape_cast %60 : vector<1x1x8x128xf32> to vector<8x128xf32>
      %62 = arith.addf %61, %59 : vector<8x128xf32>
      %c0_21 = arith.constant 0 : index
      %c0_22 = arith.constant 0 : index
      %c0_23 = arith.constant 0 : index
      %c0_24 = arith.constant 0 : index
      %63 = vector.load %arg9[%c0_21, %c0_22, %c0_23, %c0_24] : memref<1x1x8x128xf32, #tpu.memory_space<vmem>>, vector<1x1x8x128xf32>
      %64 = vector.shape_cast %63 : vector<1x1x8x128xf32> to vector<8x128xf32>
      %65 = vector.shape_cast %62 : vector<8x128xf32> to vector<1x1x8x128xf32>
      tpu.vector_store %arg9[%c0_21, %c0_22, %c0_23, %c0_24], %65 {strides = array<i32>} : memref<1x1x8x128xf32, #tpu.memory_space<vmem>>, vector<1x1x8x128xf32>,
    } else {
    }
    return
  }
  func.func @transform_0(%arg0: i32, %arg1: i32, %arg2: i32) -> (i32, i32, i32, i32) {
    %c0_i32 = arith.constant 0 : i32
    %0 = arith.minsi %arg2, %c0_i32 : i32
    %c0_i32_0 = arith.constant 0 : i32
    %c0_i32_1 = arith.constant 0 : i32
    return %arg0, %arg1, %0, %c0_i32_0 : i32, i32, i32, i32
  }
  func.func @transform_1(%arg0: i32, %arg1: i32, %arg2: i32) -> (i32, i32, i32, i32) {
    %c0_i32 = arith.constant 0 : i32
    %0 = arith.minsi %arg2, %c0_i32 : i32
    %c0_i32_0 = arith.constant 0 : i32
    %c0_i32_1 = arith.constant 0 : i32
    return %arg0, %arg1, %0, %c0_i32_0 : i32, i32, i32, i32
  }
  func.func @transform_2(%arg0: i32, %arg1: i32, %arg2: i32) -> (i32, i32) {
    %c0_i32 = arith.constant 0 : i32
    %c0_i32_0 = arith.constant 0 : i32
    %c0_i32_1 = arith.constant 0 : i32
    return %c0_i32, %c0_i32_0 : i32, i32
  }
  func.func @transform_3(%arg0: i32, %arg1: i32, %arg2: i32) -> (i32, i32) {
    %c0_i32 = arith.constant 0 : i32
    %c0_i32_0 = arith.constant 0 : i32
    %c0_i32_1 = arith.constant 0 : i32
    return %c0_i32, %c0_i32_0 : i32, i32
  }
  func.func @transform_4(%arg0: i32, %arg1: i32, %arg2: i32) -> (i32, i32) {
    %c0_i32 = arith.constant 0 : i32
    %c0_i32_0 = arith.constant 0 : i32
    %c0_i32_1 = arith.constant 0 : i32
    return %c0_i32, %c0_i32_0 : i32, i32
  }
  func.func @transform_5(%arg0: i32, %arg1: i32, %arg2: i32) -> (i32, i32) {
    %c0_i32 = arith.constant 0 : i32
    %c0_i32_0 = arith.constant 0 : i32
    %c0_i32_1 = arith.constant 0 : i32
    return %c0_i32, %c0_i32_0 : i32, i32
  }
  func.func @transform_6(%arg0: i32, %arg1: i32, %arg2: i32) -> (i32, i32, i32, i32) {
    %c0_i32 = arith.constant 0 : i32
    %c0_i32_0 = arith.constant 0 : i32
    %c0_i32_1 = arith.constant 0 : i32
    return %arg0, %arg1, %c0_i32, %c0_i32_0 : i32, i32, i32, i32
  }
}

</mosaic_0001>

<bundles_post_ra>
// kernel: tpu_custom_call.1
= control target key start
LH: loop header
LB: loop body
LE: loop exit
PB: predicated region body
PF: predicated region fallthrough
CT: control target
= control target key end

     0   :  { %s2243_s0 = inlined_call_operand.hbm [shape: f32[2,4,16,16], index: 0, kind: input, shape index: {}]   ;;  %s2244_s1 = inlined_call_operand.hbm [shape: f32[2,4,16,16], index: 1, kind: input, shape index: {}]   ;;  %s2245_s2 = inlined_call_operand.hbm [shape: f32[128,128], index: 2, kind: input, shape index: {}]   ;;  %s2246_s3 = inlined_call_operand.hbm [shape: f32[128,128], index: 3, kind: input, shape index: {}]   ;;  %s2247_s4 = inlined_call_operand.hbm [shape: f32[128,128], index: 4, kind: input, shape index: {}]   ;;  %s2248_s5 = inlined_call_operand.hbm [shape: f32[16,32], index: 5, kind: input, shape index: {}]   ;;  %s2249_s6 = inlined_call_operand.hbm [shape: f32[2,4,8,128], index: 6, kind: output, shape index: {}]  }
   0x1   :  { %2263 = sst [smem:[#allocation32_spill]] %s2243_s0 }
   0x2   :  { %2264 = sst [smem:[#allocation33_spill]] %s2245_s2 }
   0x3   :  { %2265 = sst [smem:[#allocation34_spill]] %s2246_s3 }
   0x4   :  { %2266 = sst [smem:[#allocation35_spill]] %s2247_s4 }
   0x5   :  { %2267 = sst [smem:[#allocation36_spill]] %s2248_s5 }
   0x6   :  { %2268 = sst [smem:[#allocation37_spill]] %s2249_s6 }
   0x7   :  { %11 = vsyncpa [#allocation5], 0 }
   0x8   :  { %13 = vsyncpa [#allocation5 + $0x1], 0 }
   0x9   :  { %14 = vsyncpa [#allocation8], 0 }
   0xa   :  { %16 = vsyncpa [#allocation8 + $0x1], 0 }
   0xb   :  { %17 = vsyncpa [#allocation11], 0 }
   0xc   :  { %18 = vsyncpa [#allocation14], 0 }
   0xd   :  { %19 = vsyncpa [#allocation6], 0 }
   0xe   :  { %21 = vsyncpa [#allocation6 + $0x1], 0  ;;  %s1869_s21 = smov 0   ;;  %s1871_s22 = smov 0  }
   0xf   :  { %s1873_s23 = smov 0   ;;  %s1875_s24 = smov 0  }
  0x10   :  { %s1877_s25 = smov 0   ;;  %s1879_s26 = smov 0  }
  0x11   :  { %s1881_s27 = smov 0   ;;  %s1883_s28 = smov 0  }
  0x12   :  { %s1885_s29 = smov 0   ;;  %s1887_s30 = smov 0  }
  0x13   :  { %s1889_s7 = smov 0   ;;  %s1891_s8 = smov 0  }
  0x14   :  { %s1893_s9 = smov 0  }
  0x15 LB: > { %2269 = sst [smem:[#allocation22_spill]] %s1777_s21  ;;  %s1933_s10 = sadd.s32 4294967295, %s1825_s9   ;;  %s1825_s9 = sphi %s1893_s9, %s27_s9   ;;  %s1821_s8 = sphi %s1891_s8, %s2309_s8   ;;  %s1817_s7 = sphi %s1889_s7, %s2317_s7   ;;  %s1813_s30 = sphi %s1887_s30, %s2307_s30   ;;  %s1809_s29 = sphi %s1885_s29, %s2306_s29   ;;  %s1805_s28 = sphi %s1883_s28, %s2316_s28   ;;  %s1801_s27 = sphi %s1881_s27, %s2305_s27   ;;  %s1797_s26 = sphi %s1879_s26, %s2315_s26   ;;  %s1793_s25 = sphi %s1877_s25, %s2314_s25   ;;  %s1789_s24 = sphi %s1875_s24, %s2313_s24   ;;  %s1785_s23 = sphi %s1873_s23, %s2312_s23   ;;  %s1781_s22 = sphi %s1871_s22, %s2311_s22   ;;  %s1777_s21 = sphi %s1869_s21, %s2310_s21  }
  0x16   : > { %2270 = sst [smem:[#allocation23_spill]] %s1805_s28  ;;  %s1217_s11 = sadd.s32 4294967294, %s1825_s9  }
  0x17   : > { %2271 = sst [smem:[#allocation24_spill]] %s1809_s29  ;;  %p74_p0 = scmp.ne.s32.totalorder %s1793_s25, %s1789_s24 }
  0x18   : > { %2272 = sst [smem:[#allocation25_spill]] %s1813_s30  ;;  %p75_p1 = scmp.eq.s32.totalorder %s1933_s10, 0 }
  0x19   : > { %2273 = sst [smem:[#allocation26_spill]] %s1821_s8  ;;  %p217_p2 = scmp.ne.s32.totalorder %s1785_s23, %s1781_s22 }
  0x1a   : > { %p218_p3 = scmp.eq.s32.totalorder %s1933_s10, 15  ;;  %p1943_p4 = por %p75_p1, %p74_p0 }
  0x1b   : > { %p223_p5 = scmp.ne.s32.totalorder %s1781_s22, %s1777_s21  ;;  %p224_p7 = scmp.eq.s32.totalorder %s1217_s11, 15 }
  0x1c   : > { %p1949_p6 = por %p218_p3, %p217_p2  ;;  %p1218_p8 = scmp.ge.s32.totalorder %s1825_s9, 1 }
  0x1d   : > { %p231_p9 = scmp.lt.s32.totalorder %s1825_s9, 17  ;;  %p1955_p10 = por %p224_p7, %p223_p5 }
  0x1e   : > { %s2275_s13 = scalar_select %p1949_p6, 1, 0 }
  0x1f   : > { %s2277_s14 = scalar_select %p1955_p10, 1, 0 }
  0x20   : > { %2276 = sst [smem:[#allocation27_spill]] %s2275_s13  ;;  %p1959_p11 = pnand %p1218_p8, %p231_p9 }
  0x21   : > { %2278 = sst [smem:[#allocation28_spill]] %s2277_s14  ;;  %s1827_s19 = smov [#allocation9]  }
  0x22   : > { %s2280_s2 = sld [smem:[#allocation33_spill]]  ;;  %p1338_p12 = pneg %p1959_p11 }
  0x23   : > { %s244_s20 = sshll.u32 %s1827_s19, 4  ;;  %s2282_s3 = sld [smem:[#allocation34_spill]]  ;;  %s245_s20 = int_to_ptr.vmem [resolvable:$true] %s244_s20 }
  0x24   : > { %p1970_p13 = pnand %p1338_p12, %p75_p1  ;;  %s2255_s16 = smov 128  }
  0x25   : > { %s2257_s17 = smov 8   ;;  %s2283_s4 = sld [smem:[#allocation35_spill]] }
  0x26   : > { %s1830_s13 = smov [#allocation10]   ;;  %s1831_s11 = smov [#allocation12]  }
  0x27   : > { %s258_s14 = sshll.u32 %s1830_s13, 4  ;;  %s2284_s5 = sld [smem:[#allocation36_spill]]  ;;  %s259_s14 = int_to_ptr.vmem [resolvable:$true] %s258_s14 }
  0x28   : > { %s242_s18 = sshll.u32 %s2280_s2, 4  ;;  %s1832_s13 = smov [#allocation13]   ;;  %s243_s18 = int_to_ptr.hbm [resolvable:$true] %s242_s18 }
  0x29   : > { %s256_s21 = sshll.u32 %s2282_s3, 4  ;;  %s39_s3 = sadd.s32 1, %s1813_s30  ;;  %s257_s21 = int_to_ptr.hbm [resolvable:$true] %s256_s21 }
  0x2a   : > { %1341 = dma.hbm_to_vmem [thread:$0]  (!%p1970_p13), %s243_s18, 2048, %s245_s20, [#allocation8], %s2255_s16, %s2255_s16, %s2257_s17  }
  0x2b   : > { %s270_s6 = sshll.u32 %s2283_s4, 4  ;;  %s272_s18 = sshll.u32 %s1831_s11, 4  ;;  %s271_s6 = int_to_ptr.hbm [resolvable:$true] %s270_s6  ;;  %s273_s18 = int_to_ptr.vmem [resolvable:$true] %s272_s18 }
  0x2c   : > { %1344 = dma.hbm_to_vmem [thread:$0]  (!%p1970_p13), %s257_s21, 2048, %s259_s14, [#allocation11], %s2255_s16, %s2255_s16, %s2257_s17  }
  0x2d   : > { %s284_s2 = sshll.u32 %s2284_s5, 4  ;;  %s286_s21 = sshll.u32 %s1832_s13, 4  ;;  %s285_s2 = int_to_ptr.hbm [resolvable:$true] %s284_s2  ;;  %s287_s21 = int_to_ptr.vmem [resolvable:$true] %s286_s21 }
  0x2e   : > { %1347 = dma.hbm_to_vmem [thread:$0]  (!%p1970_p13), %s271_s6, 2048, %s273_s18, [#allocation11], %s2255_s16, %s2255_s16, %s2257_s17  }
  0x2f   : > { %1350 = dma.hbm_to_vmem [thread:$0]  (!%p1970_p13), %s285_s2, 256, %s287_s21, [#allocation14], %s2255_s16, %s2255_s16, %s2257_s17  }
  0x30   : > { %p40_p0 = scmp.ge.s32.totalorder %s39_s3, 2  ;;  %s42_s19 = sadd.s32 1, %s1817_s7 }
  0x31   : > { %s46_s14 = sadd.s32 1, %s1821_s8  ;;  %s61_s6 = sadd.s32 1, %s1797_s26 }
  0x32   : > { %s2319_s3 = smov (%p40_p0, %s39_s3), 0  ;;  %s2321_s19 = smov (!%p40_p0, %s42_s19), %s1817_s7 }
  0x33   : > { %2285 = sst [smem:[#allocation29_spill]] %s2319_s3  ;;  %p44_p2 = scmp.ge.s32.totalorder %s2321_s19, 4 }
  0x34   : > { %p68_p3 = scmp.ne.s32.totalorder %s1797_s26, %s1793_s25  ;;  %p69_p7 = scmp.eq.s32.totalorder %s1825_s9, 0 }
  0x35   : > { %s2323_s19 = smov (%p44_p2, %s2321_s19), 0  ;;  %s2325_s14 = smov (!%p44_p2, %s46_s14), %s1821_s8 }
  0x36   : > { %2286 = sst [smem:[#allocation30_spill]] %s2323_s19  ;;  %p48_p5 = scmp.ge.s32.totalorder %s2325_s14, 2 }
  0x37   : > { %s55_s24 = ssub.s32 %s1817_s7, %s2323_s19  ;;  %p2020_p8 = por %p69_p7, %p68_p3 }
  0x38   : > { %s2327_s14 = smov (%p48_p5, %s2325_s14), 0  ;;  %s207_s18 = sadd.s32 1, %s1785_s23 }
  0x39   : > { %2287 = sst [smem:[#allocation31_spill]] %s2327_s14  ;;  %s54_s20 = ssub.s32 %s1821_s8, %s2327_s14 }
  0x3a   : > { %p1366_p9 = scmp.lt.s32.totalorder %s1825_s9, 16  ;;  %s56_s2 = sor.u32 %s55_s24, %s54_s20 }
  0x3b   : > { %s300_s13 = sand.u32 1, %s1797_s26   ;;  %p205_p12 = scmp.eq.s32.totalorder %s56_s2, 0 }
  0x3c   : > { %s2035_s17 = sshll.u32 %s300_s13, 4  ;;  %s1226_s4 = sshll.u32 %s1817_s7, 1 }
  0x3d   : > { %s2030_s21 = scalar_select %p205_p12, %s1785_s23, %s207_s18  }
  0x3e   : > { %s2033_s16 = scalar_select %p205_p12, %s1797_s26, %s61_s6  }
  0x3f   : > { %s1227_s5 = sshll.u32 %s1821_s8, 3  ;;  %s304_s3 = scalar_lea.vmem [#allocation4], %s2035_s17 }
  0x40   : > { %s313_s19 = sadd.s32 %s1227_s5, %s1226_s4  ;;  %s318_s30 = sshll.u32 %s304_s3, 4  ;;  %s319_s30 = int_to_ptr.vmem [resolvable:$true] %s318_s30 }
  0x41   : > { %s1228_s28 = sshll.u32 %s313_s19, 3  ;;  %s2289_s0 = sld [smem:[#allocation32_spill]] }
  0x42   : > { %p2047_p13 = pnand %p1366_p9, %p2020_p8  ;;  %s301_s20 = scalar_lea.sflag [#allocation5], %s300_s13 }
  0x44   : > { %p1615_p2 = pneg %p2047_p13 }
  0x47   : > { %s315_s24 = scalar_lea.hbm %s2289_s0, %s1228_s28  ;;  %s1618_s19 = scalar_lea.hbm %s2289_s0, 128 }
  0x48   : > { %s316_s6 = sshll.u32 %s315_s24, 4  ;;  %s317_s6 = int_to_ptr.hbm [resolvable:$true] %s316_s6 }
  0x49   : > { %s1611_s4 = sshra.s32 %s317_s6, 4  ;;  %s1612_s4 = int_to_ptr.hbm [resolvable:$true] %s1611_s4 }
  0x4a   : > { %s1613_s5 = scalar_lea.hbm %s1612_s4, 16 }
  0x4b   : > { %p1614_p0 = scmp.ne.s32.totalorder %s1612_s4, %s1613_s5  ;;  %p1620_p7 = scmp.lt.s32.totalorder %s1618_s19, %s1613_s5 }
  0x4d   : > { %p1616_p3 = pnand %p1615_p2, %p1614_p0 }
  0x4f   : > { %p1617_p5 = pneg %p1616_p3 }
  0x51   : > { %p1622_p8 = pnand %p1620_p7, %p1617_p5 }
  0x53   : > { %1625 = shalt.err (!%p1622_p8)
}
  0x54   : > { %s2291_s14 = smov 8   ;;  %s2292_s11 = smov 128  }
  0x55   : > { %1354 = dma.hbm_to_vmem [thread:$0]  (!%p2047_p13), %s317_s6, 256, %s319_s30, %s301_s20, %s2292_s11, %s2292_s11, %s2291_s14  }
  0x56   : > { %s343_s24 = scalar_lea.hbm %s2244_s1, %s1228_s28  ;;  %s332_s4 = scalar_lea.vmem [#allocation7], %s2035_s17 }
  0x57   : > { %s346_s8 = sshll.u32 %s332_s4, 4  ;;  %s344_s29 = sshll.u32 %s343_s24, 4  ;;  %s347_s8 = int_to_ptr.vmem [resolvable:$true] %s346_s8  ;;  %s345_s29 = int_to_ptr.hbm [resolvable:$true] %s344_s29 }
  0x58   : > { %s328_s5 = sand.u32 1, %s1825_s9   ;;  %s1641_s19 = sshra.s32 %s345_s29, 4  ;;  %s1642_s19 = int_to_ptr.hbm [resolvable:$true] %s1641_s19 }
  0x59   : > { %s329_s3 = scalar_lea.sflag [#allocation8], %s328_s5  ;;  %s1643_s0 = scalar_lea.hbm %s1642_s19, 16 }
  0x5a   : > { %p1644_p9 = scmp.ne.s32.totalorder %s1642_s19, %s1643_s0  ;;  %s1648_s20 = scalar_lea.hbm %s2244_s1, 128 }
  0x5b   : > { %p1650_p3 = scmp.lt.s32.totalorder %s1648_s20, %s1643_s0 }
  0x5c   : > { %p1646_p12 = pnand %p1644_p9, %p1615_p2 }
  0x5e   : > { %p1647_p0 = pneg %p1646_p12 }
  0x60   : > { %p1652_p5 = pnand %p1650_p3, %p1647_p0 }
  0x62   : > { %1655 = shalt.err (!%p1652_p5)
}
  0x63   : > { %1357 = dma.hbm_to_vmem [thread:$0]  (!%p2047_p13), %s345_s29, 256, %s347_s8, %s329_s3, %s2292_s11, %s2292_s11, %s2291_s14  }
  0x64   : > { %358 = sbr.rel (%p1959_p11) target bundleno = 733 (0x2dd), region = 44  ;;  %s360_s28 = sand.u32 (!%p1959_p11), 1, %s1793_s25  }
  0x65   : > { %s2083_s17 = sshll.u32 (!%p1959_p11), %s360_s28, 4  ;;  %s361_s2 = scalar_lea.sflag (!%p1959_p11), [#allocation5], %s360_s28 }
  0x66   : > { %s364_s13 = scalar_lea.vmem (!%p1959_p11), [#allocation4], %s2083_s17 }
  0x69   : > { %1752 = dma.done.wait (%p1943_p4), %s361_s2, 256  }
  0x6a   : > { %1754 = vsyncadd (%p1943_p4), %s361_s2, 4294967040  ;;  %s370_s0 = sand.u32 1, %s1933_s10   ;;  %s374_s15 = scalar_lea.vmem [#allocation7], %s2083_s17 }
  0x6b   : > { %s371_s8 = scalar_lea.sflag [#allocation8], %s370_s0 }
  0x6c   : > { %1756 = dma.done.wait (%p1943_p4), %s371_s8, 256  }
  0x6d   : > { %1758 = vsyncadd (%p1943_p4), %s371_s8, 4294967040 }
  0x6e   : > { %1760 = dma.done.wait (%p75_p1), [#allocation8], 2048  }
  0x6f   : > { %1762 = vsyncadd (%p75_p1), [#allocation8], 4294965248 }
  0x70   : > { %1764 = dma.done.wait (%p75_p1), [#allocation11], 4096  }
  0x71   : > { %1766 = vsyncadd (%p75_p1), [#allocation11], 4294963200 }
  0x72   : > { %1768 = dma.done.wait (%p75_p1), [#allocation14], 256  }
  0x73   : > { %1770 = vsyncadd (%p75_p1), [#allocation14], 4294967040  ;;  %s426_s12 = sand.u32 1, %s1781_s22   ;;  %p1242_p4 = scmp.ne.s32.totalorder %s1801_s27, 0 }
  0x74   : > { %s1241_s18 = sshll.u32 %s426_s12, 3 }
  0x75   : > { %s2111_s14 = scalar_lea.vmem [#allocation15], %s1241_s18  ;;  %438 = sbr.rel (%p1242_p4) target bundleno = 134 (0x86), region = 72 }
  0x7a   : > { %v1833_v0 = vmov 0.0  }
  0x7b   : > { %439 = vst [vmem:[%s2111_s14] sm:$0xff] %v1833_v0 }
  0x7c   : > { %440 = vst [vmem:[#allocation3] sm:$0xff] %v1833_v0 }
  0x7d   : > { %441 = vst [vmem:[#allocation3 + $0x38] sm:$0xff] %v1833_v0 }
  0x7e   : > { %442 = vst [vmem:[#allocation3 + $0x50] sm:$0xff] %v1833_v0 }
  0x7f   : > { %443 = vst [vmem:[#allocation3 + $0x18] sm:$0xff] %v1833_v0 }
  0x80   : > { %444 = vst [vmem:[#allocation3 + $0x30] sm:$0xff] %v1833_v0 }
  0x81   : > { %445 = vst [vmem:[#allocation3 + $0x80] sm:$0xff] %v1833_v0 }
  0x82   : > { %446 = vst [vmem:[#allocation3 + $0x88] sm:$0xff] %v1833_v0 }
  0x83   : > { %447 = vst [vmem:[#allocation3 + $0x68] sm:$0xff] %v1833_v0 }
  0x84   : > { %448 = vst [vmem:[#allocation3 + $0x8] sm:$0xff] %v1833_v0 }
  0x85   : > { %449 = vst [vmem:[#allocation3 + $0x90] sm:$0xff] %v1833_v0 }
  0x86 PF: > { %p1243_p1 = scmp.ge.s32.totalorder %s1801_s27, 1 }
  0x87   : > { %s1254_s10 = sshll.u32 (!%p1243_p1), %s1801_s27, 4 }
  0x88   : > { %453 = sbr.rel (%p1243_p1) target bundleno = 521 (0x209), region = 76  ;;  %s1255_s11 = sadd.s32 (!%p1243_p1), 4294967291, %s1254_s10 }
  0x8d   : > { %v494_v1 = vld [vmem:[#allocation9 + $0x78] sm:$0xff]  ;;  %v493_v2 = vld [vmem:[#allocation9 + $0x70] sm:$0xff]  ;;  %v492_v3 = vld [vmem:[#allocation9 + $0x68] sm:$0xff]  ;;  %vm458_vm0 = vcmask 130048   ;;  %vm584_vm1 = vcmask 261120  }
  0x8e   : > { %505 = vmatpush.msra.mxu0 %v494_v1  ;;  %1279 = vmatpush.msra.mxu3 %v494_v1  ;;  %v491_v4 = vld [vmem:[#allocation9 + $0x60] sm:$0xff]  ;;  %v490_v5 = vld [vmem:[#allocation9 + $0x58] sm:$0xff]  ;;  %v489_v6 = vld [vmem:[#allocation9 + $0x50] sm:$0xff] }
  0x8f   : > { %1278 = vmatpush.msra.mxu2 %v494_v1  ;;  %v488_v7 = vld [vmem:[#allocation9 + $0x48] sm:$0xff]  ;;  %v487_v8 = vld [vmem:[#allocation9 + $0x40] sm:$0xff]  ;;  %v486_v9 = vld [vmem:[#allocation9 + $0x38] sm:$0xff] }
  0x90   : > { %506 = vmatpush.msra.mxu0 %v493_v2  ;;  %1281 = vmatpush.msra.mxu3 %v493_v2  ;;  %v485_v10 = vld [vmem:[#allocation9 + $0x30] sm:$0xff]  ;;  %v484_v11 = vld [vmem:[#allocation9 + $0x28] sm:$0xff]  ;;  %v483_v12 = vld [vmem:[#allocation9 + $0x20] sm:$0xff] }
  0x91   : > { %1280 = vmatpush.msra.mxu2 %v493_v2  ;;  %v482_v13 = vld [vmem:[#allocation9 + $0x18] sm:$0xff]  ;;  %v481_v15 = vld [vmem:[#allocation9 + $0x10] sm:$0xff]  ;;  %v480_v17 = vld [vmem:[#allocation9 + $0x8] sm:$0xff] }
  0x92   : > { %507 = vmatpush.msra.mxu0 %v492_v3  ;;  %1283 = vmatpush.msra.mxu3 %v492_v3  ;;  %v455_v14 = vld [vmem:[%s364_s13 + $0x8] sm:$0xff]  ;;  %v479_v18 = vld [vmem:[#allocation9] sm:$0xff]  ;;  %v566_v38 = vld [vmem:[#allocation3 + $0x50] sm:$0xff] }
  0x93   : > { %1282 = vmatpush.msra.mxu2 %v492_v3  ;;  %v460_v16 = vsel %vm458_vm0, %v455_v14, 0.0  ;;  %v454_v19 = vld [vmem:[%s364_s13] sm:$0xff]  ;;  %v457_v26 = vld [vmem:[%s374_s15 + $0x8] sm:$0xff] }
  0x94   : > { %508 = vmatpush.msra.mxu0 %v491_v4  ;;  %1285 = vmatpush.msra.mxu3 %v491_v4  ;;  %v468_v20 = vmul.f32 %v460_v16, %v460_v16  ;;  %v459_v21 = vsel %vm458_vm0, %v454_v19, 0.0  ;;  %v456_v22 = vld [vmem:[%s374_s15] sm:$0xff]  ;;  %v462_v27 = vsel %vm458_vm0, %v457_v26, 0.0  ;;  %v571_v33 = vld [vmem:[#allocation3 + $0x68] sm:$0xff]  ;;  %v567_v40 = vld [vmem:[#allocation3 + $0x18] sm:$0xff] }
  0x95   : > { %1284 = vmatpush.msra.mxu2 %v491_v4  ;;  %v467_v23 = vmul.f32 %v459_v21, %v459_v21  ;;  %v461_v24 = vsel %vm458_vm0, %v456_v22, 0.0  ;;  %v472_v28 = vmul.f32 %v462_v27, %v462_v27  ;;  %v476_v30 = vmul.f32 %v462_v27, %v460_v16  ;;  %v564_v31 = vld [vmem:[#allocation3] sm:$0xff]  ;;  %v565_v42 = vld [vmem:[#allocation3 + $0x38] sm:$0xff]  ;;  %v563_v44 = vld [vmem:[#allocation13 + $0x8] sm:$0xff] }
  0x96   : > { %509 = vmatpush.msra.mxu0 %v490_v5  ;;  %1287 = vmatpush.msra.mxu3 %v490_v5  ;;  %v471_v25 = vmul.f32 %v461_v24, %v461_v24  ;;  %v475_v29 = vmul.f32 %v461_v24, %v459_v21  ;;  %v569_v35 = vld [vmem:[#allocation3 + $0x80] sm:$0xff]  ;;  %v572_v45 = vld [vmem:[#allocation3 + $0x8] sm:$0xff]  ;;  %v568_v50 = vld [vmem:[#allocation3 + $0x30] sm:$0xff] }
  0x97   : > { %1286 = vmatpush.msra.mxu2 %v490_v5  ;;  %v562_v39 = vld [vmem:[#allocation13] sm:$0xff]  ;;  %v570_v47 = vld [vmem:[#allocation3 + $0x88] sm:$0xff]  ;;  %v573_v52 = vld [vmem:[#allocation3 + $0x90] sm:$0xff] }
  0x98   : > { %510 = vmatpush.msra.mxu0 %v489_v6  ;;  %1289 = vmatpush.msra.mxu3 %v489_v6 }
  0x99   : > { %1288 = vmatpush.msra.mxu2 %v489_v6 }
  0x9a   : > { %511 = vmatpush.msra.mxu0 %v488_v7  ;;  %1291 = vmatpush.msra.mxu3 %v488_v7 }
  0x9b   : > { %1290 = vmatpush.msra.mxu2 %v488_v7 }
  0x9c   : > { %512 = vmatpush.msra.mxu0 %v487_v8  ;;  %1293 = vmatpush.msra.mxu3 %v487_v8 }
  0x9d   : > { %1292 = vmatpush.msra.mxu2 %v487_v8 }
  0x9e   : > { %513 = vmatpush.msra.mxu0 %v486_v9  ;;  %1295 = vmatpush.msra.mxu3 %v486_v9 }
  0x9f   : > { %1294 = vmatpush.msra.mxu2 %v486_v9 }
  0xa0   : > { %514 = vmatpush.msra.mxu0 %v485_v10  ;;  %1297 = vmatpush.msra.mxu3 %v485_v10 }
  0xa1   : > { %1296 = vmatpush.msra.mxu2 %v485_v10 }
  0xa2   : > { %515 = vmatpush.msra.mxu0 %v484_v11  ;;  %1299 = vmatpush.msra.mxu3 %v484_v11 }
  0xa3   : > { %1298 = vmatpush.msra.mxu2 %v484_v11 }
  0xa4   : > { %516 = vmatpush.msra.mxu0 %v483_v12  ;;  %1301 = vmatpush.msra.mxu3 %v483_v12 }
  0xa5   : > { %1300 = vmatpush.msra.mxu2 %v483_v12 }
  0xa6   : > { %517 = vmatpush.msra.mxu0 %v482_v13  ;;  %1303 = vmatpush.msra.mxu3 %v482_v13 }
  0xa7   : > { %1302 = vmatpush.msra.mxu2 %v482_v13  ;;  %v770_v13 = vlaneseq }
  0xa8   : > { %518 = vmatpush.msra.mxu0 %v481_v15  ;;  %1305 = vmatpush.msra.mxu3 %v481_v15 }
  0xa9   : > { %1304 = vmatpush.msra.mxu2 %v481_v15 }
  0xaa   : > { %519 = vmatpush.msra.mxu0 %v480_v17  ;;  %1307 = vmatpush.msra.mxu3 %v480_v17 }
  0xab   : > { %1306 = vmatpush.msra.mxu2 %v480_v17 }
  0xac   : > { %520 = vmatpush.msra.mxu0 %v479_v18  ;;  %1309 = vmatpush.msra.mxu3 %v479_v18 }
  0xad   : > { %1274 = vmatmul.msk.f32.vlgmr.msra.gmra.mxu0 %vm458_vm0, %v454_v19  ;;  %536 = vmatmul.f32.vlgmr.msra.gmra.mxu3 %v468_v20  ;;  %v771_v20 = vshrl.u32 %v770_v13, 7 }
  0xae   : > { %1308 = vmatpush.msra.mxu2 %v479_v18 }
  0xaf   : > { %533 = vmatmul.f32.vlgmr.msra.gmra.mxu2 %v467_v23 }
  0xb5   : > { %1275 = vmatmul.msk.f32.gmra.mxu0 %vm458_vm0, %v455_v14  ;;  %539 = vmatmul.f32.gmra.mxu3 %v471_v25  ;;  %v773_v25 = vstv %s1255_s11 }
  0xbd   : > { %1276 = vmatmul.msk.f32.gmra.mxu0 %vm458_vm0, %v456_v22  ;;  %542 = vmatmul.f32.gmra.mxu3 %v472_v28 }
  0xc5   : > { %1277 = vmatmul.msk.f32.gmra.mxu0 %vm458_vm0, %v457_v26  ;;  %545 = vmatmul.f32.gmra.mxu3 %v475_v29  ;;  %v772_v26 = vadd.s32 8, %v771_v20 }
  0xcd   : > { %548 = vmatmul.f32.gmra.mxu3 %v476_v30  ;;  %v774_v30 = vadd.s32 %v773_v25, %v771_v20 }
  0xcf   : > { %vm778_vm5 = vcmp.ge.s32.totalorder %v774_v30, 0  ;;  %vm780_vm6 = vcmp.lt.s32.totalorder %v774_v30, 16 }
  0xd0   : > { %vm782_vm11 = vmand %vm778_vm5, %vm780_vm6 }
 0x12a   : > { %v522_v32 = vpop.f32.mrf.mxu0 }
 0x12b   : > { %803 = vst [vmem:[#allocation3] sm:$0xff] %v522_v32 }
 0x130   : > { %v537_v34 = vpop.f32.mrf.mxu3 }
 0x131   : > { %810 = vst [vmem:[#allocation3 + $0x68] sm:$0xff] %v537_v34 }
 0x132   : > { %v525_v36 = vpop.f32.mrf.mxu0  ;;  %v534_v37 = vpop.f32.mrf.mxu2 }
 0x133   : > { %603 = vmatpush.msra.mxu1 %v525_v36  ;;  %808 = vst [vmem:[#allocation3 + $0x80] sm:$0xff] %v525_v36 }
 0x134   : > { %805 = vst [vmem:[#allocation3 + $0x50] sm:$0xff] %v534_v37 }
 0x135   : > { %604 = vmatpush.msra.mxu1 %v522_v32 }
 0x137   : > { %605 = vmatpush.msra.mxu1 %v569_v35 }
 0x138   : > { %v540_v41 = vpop.f32.mrf.mxu3 }
 0x139   : > { %606 = vmatpush.msra.mxu1 %v564_v31  ;;  %806 = vst [vmem:[#allocation3 + $0x18] sm:$0xff] %v540_v41 }
 0x13a   : > { %v528_v43 = vpop.f32.mrf.mxu0  ;;  %1244 = vmatmul.msk.f32.vlgmr.msra.gmra.mxu1 %vm584_vm1, %v562_v39 }
 0x13b   : > { %804 = vst [vmem:[#allocation3 + $0x38] sm:$0xff] %v528_v43 }
 0x140   : > { %v543_v46 = vpop.f32.mrf.mxu3 }
 0x141   : > { %811 = vst [vmem:[#allocation3 + $0x8] sm:$0xff] %v543_v46 }
 0x142   : > { %v531_v48 = vpop.f32.mrf.mxu0  ;;  %1245 = vmatmul.msk.f32.gmra.mxu1 %vm584_vm1, %v563_v44 }
 0x143   : > { %626 = vmatpush.msrb.mxu1 %v531_v48  ;;  %1310 = vmatpush.msrb.mxu2 %v531_v48  ;;  %809 = vst [vmem:[#allocation3 + $0x88] sm:$0xff] %v531_v48 }
 0x145   : > { %627 = vmatpush.msrb.mxu1 %v528_v43  ;;  %1311 = vmatpush.msrb.mxu2 %v528_v43 }
 0x147   : > { %628 = vmatpush.msrb.mxu1 %v570_v47  ;;  %1312 = vmatpush.msrb.mxu2 %v570_v47 }
 0x148   : > { %v546_v49 = vpop.f32.mrf.mxu3 }
 0x149   : > { %629 = vmatpush.msrb.mxu1 %v565_v42  ;;  %1313 = vmatpush.msrb.mxu2 %v565_v42  ;;  %807 = vst [vmem:[#allocation3 + $0x30] sm:$0xff] %v546_v49  ;;  %v777_v42 = vand.u32 127, %v770_v13 }
 0x14a   : > { %1246 = vmatmul.msk.f32.vlgmr.msrb.gmra.mxu1 %vm584_vm1, %v562_v39  ;;  %1247 = vmatmul.msk.f32.vlgmr.msrb.gmra.mxu2 %vm584_vm1, %v563_v44 }
 0x14b   : > { %649 = vmatpush.msra.mxu1 %v537_v34  ;;  %vm784_vm12 = vcmp.lt.s32.totalorder %v777_v42, 16 }
 0x14c   : > { %vm785_vm0 = vmand %vm782_vm11, %vm784_vm12 }
 0x14d   : > { %650 = vmatpush.msra.mxu1 %v534_v37 }
 0x14f   : > { %651 = vmatpush.msra.mxu1 %v571_v33  ;;  %v775_v33 = vadd.s32 %v773_v25, %v772_v26 }
 0x150   : > { %v549_v51 = vpop.f32.mrf.mxu3 }
 0x151   : > { %652 = vmatpush.msra.mxu1 %v566_v38  ;;  %695 = vmatpush.msra.mxu2 %v549_v51  ;;  %812 = vst [vmem:[#allocation3 + $0x90] sm:$0xff] %v549_v51  ;;  %vm779_vm7 = vcmp.ge.s32.totalorder %v775_v33, 0  ;;  %vm781_vm8 = vcmp.lt.s32.totalorder %v775_v33, 16 }
 0x152   : > { %1248 = vmatmul.msk.f32.vlgmr.msra.gmra.mxu1 %vm584_vm1, %v562_v39  ;;  %vm783_vm14 = vmand %vm779_vm7, %vm781_vm8 }
 0x153   : > { %672 = vmatpush.msrb.mxu1 %v543_v46  ;;  %696 = vmatpush.msra.mxu2 %v546_v49 }
 0x155   : > { %673 = vmatpush.msrb.mxu1 %v540_v41  ;;  %697 = vmatpush.msra.mxu2 %v573_v52 }
 0x157   : > { %674 = vmatpush.msrb.mxu1 %v572_v45  ;;  %698 = vmatpush.msra.mxu2 %v568_v50 }
 0x158   : > { %1252 = vmatmul.msk.f32.vlgmr.msra.gmra.mxu2 %vm584_vm1, %v562_v39 }
 0x159   : > { %675 = vmatpush.msrb.mxu1 %v567_v40 }
 0x15a   : > { %1249 = vmatmul.msk.f32.gmra.mxu1 %vm584_vm1, %v563_v44 }
 0x160   : > { %1253 = vmatmul.msk.f32.gmra.mxu2 %vm584_vm1, %v563_v44 }
 0x162   : > { %1250 = vmatmul.msk.f32.vlgmr.msrb.gmra.mxu1 %vm584_vm1, %v562_v39 }
 0x16a   : > { %1251 = vmatmul.msk.f32.gmra.mxu1 %vm584_vm1, %v563_v44 }
 0x1b7   : > { %v608_v53 = vpop.f32.mrf.mxu1 }
 0x1b8   : > { %v706_v59 = vmul.f32 %v608_v53, %v608_v53 }
 0x1bf   : > { %v611_v54 = vpop.f32.mrf.mxu1 }
 0x1c0   : > { %v707_v7 = vmul.f32 %v611_v54, %v611_v54 }
 0x1c7   : > { %v631_v55 = vpop.f32.mrf.mxu1 }
 0x1c8   : > { %v708_v58 = vmul.f32 %v631_v55, %v631_v55  ;;  %v710_v19 = vmul.f32 %v631_v55, %v608_v53 }
 0x1ca   : > { %v728_v62 = vadd.f32 %v708_v58, %v706_v59  ;;  %v718_v29 = vmul.f32 2.0, %v710_v19 }
 0x1cc   : > { %v730_v2 = vadd.f32 0.0001, %v728_v62  ;;  %v720_v37 = vadd.f32 0.0001, %v718_v29 }
 0x1cd   : > { %v634_v60 = vpop.f32.mrf.mxu2 }
 0x1ce   : > { %v709_v4 = vmul.f32 %v634_v60, %v634_v60  ;;  %v711_v22 = vmul.f32 %v634_v60, %v611_v54 }
 0x1cf   : > { %v654_v56 = vpop.f32.mrf.mxu1 }
 0x1d0   : > { %v712_v63 = vsub.f32 %v654_v56, %v706_v59  ;;  %v729_v9 = vadd.f32 %v709_v4, %v707_v7  ;;  %v719_v40 = vmul.f32 2.0, %v711_v22 }
 0x1d2   : > { %v731_v14 = vadd.f32 0.0001, %v729_v9  ;;  %v721_v52 = vadd.f32 0.0001, %v719_v40 }
 0x1d7   : > { %v657_v57 = vpop.f32.mrf.mxu1 }
 0x1d8   : > { %v713_v10 = vsub.f32 %v657_v57, %v707_v7 }
 0x1db   : > { %v700_v5 = vpop.f32.mrf.mxu2 }
 0x1dc   : > { %v716_v24 = vsub.f32 %v700_v5, %v710_v19 }
 0x1de   : > { %v722_v31 = vmul.f32 2.0, %v716_v24 }
 0x1df   : > { %v677_v61 = vpop.f32.mrf.mxu1 }
 0x1e0   : > { %v714_v0 = vsub.f32 %v677_v61, %v708_v58  ;;  %v724_v43 = vadd.f32 0.0009, %v722_v31 }
 0x1e2   : > { %v732_v1 = vadd.f32 %v714_v0, %v712_v63  ;;  %v726_v53 = vmul.f32 %v724_v43, %v720_v37  ;;  %v790_v63 = vld [vmem:[%s2111_s14] sm:$0xff] }
 0x1e3   : > { %v703_v21 = vpop.f32.mrf.mxu2 }
 0x1e4   : > { %v734_v3 = vadd.f32 0.0009, %v732_v1  ;;  %v717_v28 = vsub.f32 %v703_v21, %v711_v22 }
 0x1e6   : > { %v736_v6 = vmul.f32 %v734_v3, %v730_v2  ;;  %v723_v36 = vmul.f32 2.0, %v717_v28 }
 0x1e7   : > { %v680_v8 = vpop.f32.mrf.mxu1 }
 0x1e8   : > { %1483 = vrcp.f32 %v736_v6  ;;  %v715_v11 = vsub.f32 %v680_v8, %v709_v4  ;;  %v749_v35 = vand.u32 2147483648, %v736_v6  ;;  %vm743_vm3 = vweird.f32 %v736_v6 }
 0x1e9   : > { %v747_v38 = vand.u32 2147483647, %v736_v6  ;;  %v725_v47 = vadd.f32 0.0009, %v723_v36 }
 0x1ea   : > { %v733_v12 = vadd.f32 %v715_v11, %v713_v10  ;;  %v750_v46 = vor.u32 1.1754944e-38, %v749_v35 }
 0x1eb   : > { %vm748_vm9 = vcmp.eq.f32.partialorder %v747_v38, 8.507059e+37  ;;  %v727_v57 = vmul.f32 %v725_v47, %v721_v52 }
 0x1ec   : > { %v735_v15 = vadd.f32 0.0009, %v733_v12 }
 0x1ee   : > { %v1484_v16 = vpop.eup %1483  ;;  %v737_v18 = vmul.f32 %v735_v15, %v731_v14 }
 0x1ef   : > { %v739_v17 = vmul.f32 %v1484_v16, %v736_v6  ;;  %vm744_vm2 = vweird.f32 %v1484_v16 }
 0x1f0   : > { %1485 = vrcp.f32 %v737_v18  ;;  %vm2143_vm4 = vmor %vm743_vm3, %vm744_vm2  ;;  %v764_v48 = vand.u32 2147483648, %v737_v18  ;;  %v762_v50 = vand.u32 2147483647, %v737_v18  ;;  %vm758_vm13 = vweird.f32 %v737_v18 }
 0x1f1   : > { %v740_v23 = vsub.f32 1.0, %v739_v17  ;;  %vm786_vm2 = vmand %vm783_vm14, %vm784_vm12 }
 0x1f2   : > { %v765_v55 = vor.u32 1.1754944e-38, %v764_v48  ;;  %vm763_vm1 = vcmp.eq.f32.partialorder %v762_v50, 8.507059e+37 }
 0x1f3   : > { %v741_v27 = vmul.f32 %v1484_v16, %v740_v23 }
 0x1f5   : > { %v742_v32 = vadd.f32 %v1484_v16, %v741_v27 }
 0x1f6   : > { %v1486_v34 = vpop.eup %1485 }
 0x1f7   : > { %v754_v39 = vmul.f32 %v1486_v34, %v737_v18  ;;  %v746_v44 = vsel %vm2143_vm4, %v1484_v16, %v742_v32  ;;  %vm759_vm10 = vweird.f32 %v1486_v34 }
 0x1f8   : > { %v751_v51 = vsel %vm748_vm9, %v750_v46, %v746_v44  ;;  %vm760_vm15 = vmor %vm758_vm13, %vm759_vm10 }
 0x1f9   : > { %v755_v45 = vsub.f32 1.0, %v754_v39  ;;  %v752_v56 = vmul.f32 %v751_v51, %v726_v53 }
 0x1fb   : > { %v756_v49 = vmul.f32 %v1486_v34, %v755_v45  ;;  %v787_v61 = vsel %vm785_vm0, %v752_v56, 0.0 }
 0x1fd   : > { %v757_v54 = vadd.f32 %v1486_v34, %v756_v49 }
 0x1ff   : > { %v761_v58 = vsel %vm760_vm15, %v1486_v34, %v757_v54 }
 0x200   : > { %v766_v59 = vsel %vm763_vm1, %v765_v55, %v761_v58 }
 0x201   : > { %v767_v60 = vmul.f32 %v766_v59, %v727_v57 }
 0x203   : > { %v788_v62 = vsel %vm786_vm2, %v767_v60, 0.0 }
 0x204   : > { %v789_v0 = vadd.f32 %v788_v62, %v787_v61 }
 0x206   : > { %v791_v1 = vadd.f32 %v790_v63, %v789_v0 }
 0x208   : > { %792 = vst [vmem:[%s2111_s14] sm:$0xff] %v791_v1 }
 0x209 PF: > { %p1256_p11 = scmp.ne.s32.totalorder %s1801_s27, 1 }
 0x20a   : > { %s1267_s24 = sshll.u32 (!%p1256_p11), %s1801_s27, 4 }
 0x20b   : > { %816 = sbr.rel (%p1256_p11) target bundleno = 710 (0x2c6), region = 80  ;;  %s1268_s4 = sadd.s32 (!%p1256_p11), 4294967291, %s1267_s24 }
 0x210   : > { %v824_v2 = vld [vmem:[#allocation3 + $0x80] sm:$0xff]  ;;  %v826_v3 = vld [vmem:[#allocation3 + $0x68] sm:$0xff]  ;;  %v821_v5 = vld [vmem:[#allocation3 + $0x50] sm:$0xff]  ;;  %vm829_vm3 = vcmask 130048   ;;  %v1015_v37 = vlaneseq  ;;  %v1018_v51 = vstv %s1268_s4 }
 0x211   : > { %v819_v4 = vld [vmem:[#allocation3] sm:$0xff]  ;;  %1314 = vmatpush.msra.mxu1 %v824_v2  ;;  %896 = vmatpush.msra.mxu2 %v826_v3  ;;  %v818_v6 = vld [vmem:[#allocation13 + $0x8] sm:$0xff]  ;;  %v820_v10 = vld [vmem:[#allocation3 + $0x38] sm:$0xff] }
 0x212   : > { %850 = vmatpush.msra.mxu0 %v824_v2  ;;  %v825_v7 = vld [vmem:[#allocation3 + $0x88] sm:$0xff]  ;;  %v817_v8 = vld [vmem:[#allocation13] sm:$0xff]  ;;  %v828_v11 = vld [vmem:[#allocation3 + $0x90] sm:$0xff]  ;;  %v1016_v44 = vshrl.u32 %v1015_v37, 7  ;;  %v1022_v62 = vand.u32 127, %v1015_v37 }
 0x213   : > { %1315 = vmatpush.msra.mxu1 %v819_v4  ;;  %897 = vmatpush.msra.mxu2 %v821_v5  ;;  %v827_v9 = vld [vmem:[#allocation3 + $0x8] sm:$0xff]  ;;  %v822_v12 = vld [vmem:[#allocation3 + $0x18] sm:$0xff]  ;;  %v823_v13 = vld [vmem:[#allocation3 + $0x30] sm:$0xff] }
 0x214   : > { %1258 = vmatmul.msk.f32.vlgmr.msra.gmra.mxu1 %vm829_vm3, %v818_v6  ;;  %1261 = vmatmul.msk.f32.vlgmr.msra.gmra.mxu2 %vm829_vm3, %v817_v8  ;;  %v1017_v49 = vadd.s32 8, %v1016_v44  ;;  %v1019_v55 = vadd.s32 %v1018_v51, %v1016_v44  ;;  %vm1029_vm14 = vcmp.lt.s32.totalorder %v1022_v62, 16 }
 0x215   : > { %873 = vmatpush.msrb.mxu1 %v825_v7  ;;  %851 = vmatpush.msra.mxu0 %v819_v4 }
 0x216   : > { %919 = vmatpush.msra.mxu3 %v827_v9  ;;  %1257 = vmatmul.msk.f32.vlgmr.msra.gmra.mxu0 %vm829_vm3, %v817_v8  ;;  %v1020_v56 = vadd.s32 %v1018_v51, %v1017_v49  ;;  %vm1023_vm7 = vcmp.ge.s32.totalorder %v1019_v55, 0  ;;  %vm1025_vm8 = vcmp.lt.s32.totalorder %v1019_v55, 16 }
 0x217   : > { %874 = vmatpush.msrb.mxu1 %v820_v10  ;;  %942 = vmatpush.msrb.mxu0 %v828_v11  ;;  %vm1027_vm13 = vmand %vm1023_vm7, %vm1025_vm8 }
 0x218   : > { %920 = vmatpush.msra.mxu3 %v822_v12  ;;  %vm1024_vm9 = vcmp.ge.s32.totalorder %v1020_v56, 0  ;;  %vm1026_vm11 = vcmp.lt.s32.totalorder %v1020_v56, 16  ;;  %vm1030_vm2 = vmand %vm1027_vm13, %vm1029_vm14 }
 0x219   : > { %1263 = vmatmul.msk.f32.vlgmr.msra.gmra.mxu3 %vm829_vm3, %v817_v8  ;;  %943 = vmatpush.msrb.mxu0 %v823_v13  ;;  %vm1028_vm0 = vmand %vm1024_vm9, %vm1026_vm11 }
 0x21c   : > { %1259 = vmatmul.msk.f32.vlgmr.msrb.gmra.mxu1 %vm829_vm3, %v817_v8  ;;  %1262 = vmatmul.msk.f32.gmra.mxu2 %vm829_vm3, %v818_v6 }
 0x21e   : > { %1265 = vmatmul.msk.f32.vlgmr.msrb.gmra.mxu0 %vm829_vm3, %v817_v8 }
 0x221   : > { %1264 = vmatmul.msk.f32.gmra.mxu3 %vm829_vm3, %v818_v6 }
 0x224   : > { %1260 = vmatmul.msk.f32.gmra.mxu1 %vm829_vm3, %v818_v6 }
 0x226   : > { %1266 = vmatmul.msk.f32.gmra.mxu0 %vm829_vm3, %v818_v6 }
 0x291   : > { %v856_v14 = vpop.f32.mrf.mxu1 }
 0x292   : > { %v952_v31 = vmul.f32 %v856_v14, %v856_v14 }
 0x293   : > { %v853_v15 = vpop.f32.mrf.mxu0 }
 0x294   : > { %v951_v16 = vmul.f32 %v853_v15, %v853_v15 }
 0x297   : > { %v899_v17 = vpop.f32.mrf.mxu2 }
 0x298   : > { %v957_v20 = vsub.f32 %v899_v17, %v951_v16 }
 0x299   : > { %v876_v18 = vpop.f32.mrf.mxu1 }
 0x29a   : > { %v953_v19 = vmul.f32 %v876_v18, %v876_v18  ;;  %v955_v42 = vmul.f32 %v876_v18, %v853_v15 }
 0x29b   : > { %v945_v32 = vpop.f32.mrf.mxu0 }
 0x29c   : > { %v922_v21 = vpop.f32.mrf.mxu3  ;;  %v973_v22 = vadd.f32 %v953_v19, %v951_v16  ;;  %v961_v50 = vsub.f32 %v945_v32, %v955_v42  ;;  %v963_v54 = vmul.f32 2.0, %v955_v42 }
 0x29d   : > { %v959_v23 = vsub.f32 %v922_v21, %v953_v19 }
 0x29e   : > { %v975_v25 = vadd.f32 0.0001, %v973_v22  ;;  %v967_v57 = vmul.f32 2.0, %v961_v50  ;;  %v965_v1 = vadd.f32 0.0001, %v963_v54 }
 0x29f   : > { %v977_v24 = vadd.f32 %v959_v23, %v957_v20  ;;  %v902_v30 = vpop.f32.mrf.mxu2 }
 0x2a0   : > { %v958_v34 = vsub.f32 %v902_v30, %v952_v31  ;;  %v969_v3 = vadd.f32 0.0009, %v967_v57 }
 0x2a1   : > { %v979_v26 = vadd.f32 0.0009, %v977_v24  ;;  %v879_v27 = vpop.f32.mrf.mxu1  ;;  %v1035_v24 = vld [vmem:[%s2111_s14] sm:$0xff] }
 0x2a2   : > { %v954_v28 = vmul.f32 %v879_v27, %v879_v27  ;;  %v956_v46 = vmul.f32 %v879_v27, %v856_v14  ;;  %v971_v13 = vmul.f32 %v969_v3, %v965_v1 }
 0x2a3   : > { %v981_v29 = vmul.f32 %v979_v26, %v975_v25  ;;  %v948_v48 = vpop.f32.mrf.mxu0 }
 0x2a4   : > { %v925_v33 = vpop.f32.mrf.mxu3  ;;  %v974_v35 = vadd.f32 %v954_v28, %v952_v31  ;;  %v962_v53 = vsub.f32 %v948_v48, %v956_v46  ;;  %v964_v5 = vmul.f32 2.0, %v956_v46 }
 0x2a5   : > { %1487 = vrcp.f32 %v981_v29  ;;  %v960_v36 = vsub.f32 %v925_v33, %v954_v28  ;;  %v992_v60 = vand.u32 2147483647, %v981_v29  ;;  %v994_v61 = vand.u32 2147483648, %v981_v29 }
 0x2a6   : > { %v976_v39 = vadd.f32 0.0001, %v974_v35  ;;  %vm988_vm5 = vweird.f32 %v981_v29  ;;  %v968_v0 = vmul.f32 2.0, %v962_v53  ;;  %v966_v14 = vadd.f32 0.0001, %v964_v5 }
 0x2a7   : > { %v978_v38 = vadd.f32 %v960_v36, %v958_v34  ;;  %vm993_vm10 = vcmp.eq.f32.partialorder %v992_v60, 8.507059e+37  ;;  %v995_v7 = vor.u32 1.1754944e-38, %v994_v61 }
 0x2a8   : > { %v970_v9 = vadd.f32 0.0009, %v968_v0 }
 0x2a9   : > { %v980_v40 = vadd.f32 0.0009, %v978_v38 }
 0x2aa   : > { %v972_v18 = vmul.f32 %v970_v9, %v966_v14 }
 0x2ab   : > { %v1488_v41 = vpop.eup %1487  ;;  %v982_v45 = vmul.f32 %v980_v40, %v976_v39 }
 0x2ac   : > { %v984_v43 = vmul.f32 %v1488_v41, %v981_v29  ;;  %vm989_vm4 = vweird.f32 %v1488_v41 }
 0x2ad   : > { %1489 = vrcp.f32 %v982_v45  ;;  %vm2165_vm6 = vmor %vm988_vm5, %vm989_vm4  ;;  %v1009_v8 = vand.u32 2147483648, %v982_v45  ;;  %v1007_v11 = vand.u32 2147483647, %v982_v45  ;;  %vm1003_vm15 = vweird.f32 %v982_v45 }
 0x2ae   : > { %v985_v47 = vsub.f32 1.0, %v984_v43  ;;  %vm1031_vm4 = vmand %vm1028_vm0, %vm1029_vm14 }
 0x2af   : > { %v1010_v16 = vor.u32 1.1754944e-38, %v1009_v8  ;;  %vm1008_vm3 = vcmp.eq.f32.partialorder %v1007_v11, 8.507059e+37 }
 0x2b0   : > { %v986_v52 = vmul.f32 %v1488_v41, %v985_v47 }
 0x2b2   : > { %v987_v58 = vadd.f32 %v1488_v41, %v986_v52 }
 0x2b3   : > { %v1490_v59 = vpop.eup %1489 }
 0x2b4   : > { %v999_v63 = vmul.f32 %v1490_v59, %v982_v45  ;;  %v991_v4 = vsel %vm2165_vm6, %v1488_v41, %v987_v58  ;;  %vm1004_vm12 = vweird.f32 %v1490_v59 }
 0x2b5   : > { %v996_v12 = vsel %vm993_vm10, %v995_v7, %v991_v4  ;;  %vm1005_vm1 = vmor %vm1003_vm15, %vm1004_vm12 }
 0x2b6   : > { %v1000_v6 = vsub.f32 1.0, %v999_v63  ;;  %v997_v17 = vmul.f32 %v996_v12, %v971_v13 }
 0x2b8   : > { %v1001_v10 = vmul.f32 %v1490_v59, %v1000_v6  ;;  %v1032_v22 = vsel %vm1030_vm2, %v997_v17, 0.0 }
 0x2ba   : > { %v1002_v15 = vadd.f32 %v1490_v59, %v1001_v10 }
 0x2bc   : > { %v1006_v19 = vsel %vm1005_vm1, %v1490_v59, %v1002_v15 }
 0x2bd   : > { %v1011_v20 = vsel %vm1008_vm3, %v1010_v16, %v1006_v19 }
 0x2be   : > { %v1012_v21 = vmul.f32 %v1011_v20, %v972_v18 }
 0x2c0   : > { %v1033_v23 = vsel %vm1031_vm4, %v1012_v21, 0.0 }
 0x2c1   : > { %v1034_v25 = vadd.f32 %v1033_v23, %v1032_v22 }
 0x2c3   : > { %v1036_v26 = vadd.f32 %v1035_v24, %v1034_v25 }
 0x2c5   : > { %1037 = vst [vmem:[%s2111_s14] sm:$0xff] %v1036_v26 }
 0x2c6 PF: > { %s2297_s27 = sld [smem:[#allocation24_spill]]  ;;  %s1053_s30 = sshll.u32 %s2111_s14, 4  ;;  %s1054_s30 = int_to_ptr.vmem [resolvable:$true] %s1053_s30 }
 0x2c7   : > { %s2298_s29 = sld [smem:[#allocation23_spill]]  ;;  %s1039_s0 = scalar_lea.sflag [#allocation6], %s426_s12 }
 0x2c8   : > { %s2300_s17 = sld [smem:[#allocation37_spill]] }
 0x2cc   : > { %s1270_s3 = sshll.u32 %s2297_s27, 2 }
 0x2cd   : > { %s1049_s19 = sadd.s32 %s2298_s29, %s1270_s3 }
 0x2ce   : > { %s1271_s6 = sshll.u32 %s1049_s19, 3  ;;  %s1691_s14 = scalar_lea.hbm %s2300_s17, 64 }
 0x2cf   : > { %s1051_s2 = scalar_lea.hbm %s2300_s17, %s1271_s6 }
 0x2d0   : > { %s1055_s13 = sshll.u32 %s1051_s2, 4  ;;  %s1056_s13 = int_to_ptr.hbm [resolvable:$true] %s1055_s13 }
 0x2d1   : > { %s1685_s8 = sshra.s32 %s1056_s13, 4  ;;  %s1686_s8 = int_to_ptr.hbm [resolvable:$true] %s1685_s8 }
 0x2d2   : > { %s1687_s15 = scalar_lea.hbm %s1686_s8, 8  ;;  %p1692_p8 = scmp.lt.s32.totalorder %s1686_s8, %s2300_s17 }
 0x2d3   : > { %p1688_p13 = scmp.ne.s32.totalorder %s1686_s8, %s1687_s15  ;;  %p1693_p9 = scmp.lt.s32.totalorder %s1691_s14, %s1687_s15 }
 0x2d5   : > { %p1689_p2 = pnand %p1688_p13, %p1949_p6  ;;  %p1694_p12 = por %p1693_p9, %p1692_p8 }
 0x2d7   : > { %p1690_p7 = pneg %p1689_p2 }
 0x2d9   : > { %p1695_p0 = pnand %p1694_p12, %p1690_p7 }
 0x2db   : > { %1698 = shalt.err (!%p1695_p0)
}
 0x2dc   : > { %1336 = dma.vmem_to_hbm [thread:$0]  (%p1949_p6), %s1054_s30, 128, %s1056_s13, %s1039_s0  }
 0x2dd PF: > { %s2301_s12 = sld [smem:[#allocation22_spill]]  ;;  %p1371_p3 = scmp.ge.s32.totalorder %s1825_s9, 2 }
 0x2df   : > { %p1359_p5 = pnand %p1371_p3, %p1955_p10 }
 0x2e1   : > { %p1360_p4 = pneg %p1359_p5 }
 0x2e3   : > { %s1067_s27 = sand.u32 1, %s2301_s12  }
 0x2e4   : > { %s1068_s29 = scalar_lea.sflag [#allocation6], %s1067_s27 }
 0x2e5   : > { %1772 = dma.done.wait (%p1360_p4), %s1068_s29, 128  }
 0x2e6   : > { %1774 = vsyncadd (%p1360_p4), %s1068_s29, 4294967168  ;;  %s27_s9 = sadd.s32 1, %s1825_s9   ;;  %s2304_s5 = smov %s2030_s21 }
 0x2e7   : > { %p2199_p1 = scmp.ge.s32.totalorder %s27_s9, 18   ;;  %s2305_s27 = sld [smem:[#allocation25_spill]] }
 0x2e8   : > { %s2306_s29 = sld [smem:[#allocation26_spill]]  ;;  %s2310_s21 = smov %s1781_s22 }
 0x2e9   : > { %s2307_s30 = sld [smem:[#allocation29_spill]]  ;;  %s2311_s22 = smov %s1785_s23 }
 0x2ea   : > { %s2308_s19 = sld [smem:[#allocation30_spill]]  ;;  %s2312_s23 = smov %s2304_s5 }
 0x2eb   : > { %s2309_s8 = sld [smem:[#allocation31_spill]]  ;;  %s2313_s24 = smov %s1793_s25 }
 0x2ec   : > { %s2314_s25 = smov %s1797_s26  ;;  %s2315_s26 = smov %s2033_s16 }
 0x2ed   : > { %s2316_s28 = smov %s1817_s7  ;;  %26 = sbr.rel (!%p2199_p1) target bundleno = 21 (0x15), region = 130 }
 0x2f0   : > { %s2317_s7 = smov %s2308_s19 }
 0x2f2   :  { %1074 = vsyncpa [#allocation5], 1 }
 0x2f3   :  { %1076 = vsyncpa [#allocation5 + $0x1], 1 }
 0x2f4   :  { %1077 = vsyncpa [#allocation8], 1 }
 0x2f5   :  { %1079 = vsyncpa [#allocation8 + $0x1], 1 }
 0x2f6   :  { %1080 = vsyncpa [#allocation11], 1 }
 0x2f7   :  { %1081 = vsyncpa [#allocation14], 1 }
 0x2f8   :  { %1082 = vsyncpa [#allocation6], 1 }
 0x2f9   :  { %1084 = vsyncpa [#allocation6 + $0x1], 1 }

</bundles_post_ra>
